<compile_context>
chip_gen: v7x
topology: tpu7x:2x2x1
jax: 0.10.0
libtpu: 0.0.40
codegen_flags: <defaults>
</compile_context>

<pallas_src>
import functools

import jax
import jax.numpy as jnp
from jax.experimental import pallas as pl
from jax.experimental.pallas import tpu as pltpu


def _round_up(x: int, m: int) -> int:
    return ((x + m - 1) // m) * m


def _cdiv(a: int, b: int) -> int:
    return (a + b - 1) // b


# ----------------------------------------------------------------------------
# Kernel
# ----------------------------------------------------------------------------
def _kan_fused_kernel(x_ref, *refs, degree: int, num_layers: int, activation_dtype):
    """Fused KAN forward over all Chebyshev layers for one (tb, input_size) batch tile.

    refs = (w_0, b_0, ..., w_{L-1}, b_{L-1}, o_ref[, feat_ref])
      w_l      : (in_l * degree, out_l)  rows ordered [T_1 block | ... | T_degree block]
      b_l      : (1, out_l)              bias = sum_i C[i, o, 0]  (the T_0 == 1 term)
      feat_ref : (tb, degree * max_in) VMEM scratch slab (present iff degree >= 2)
    """
    o_ref = refs[2 * num_layers]
    feat_ref = refs[2 * num_layers + 1] if len(refs) > 2 * num_layers + 1 else None

    h = x_ref[...].astype(jnp.float32)

    for l in range(num_layers):
        w_ref = refs[2 * l]
        b_ref = refs[2 * l + 1]

        xt = jnp.tanh(h.astype(activation_dtype))      # squash to [-1, 1]
        in_l = xt.shape[-1]

        if degree == 1:
            t_all = xt.astype(w_ref.dtype)
        else:
            # Write T_1..T_degree in place into the scratch slab at static column offsets:
            # no concatenate copy, no extra cross-lane relayout of a fresh buffer.
            feat_ref[:, 0:in_l] = xt.astype(feat_ref.dtype)
            xt2 = xt + xt                               # hoisted 2*x factor
            t_prev, t_cur = jnp.ones_like(xt), xt
            for d in range(2, degree + 1):
                t_next = xt2 * t_cur - t_prev
                feat_ref[:, (d - 1) * in_l:d * in_l] = t_next.astype(feat_ref.dtype)
                t_prev, t_cur = t_cur, t_next
            t_all = feat_ref[:, 0:degree * in_l]

        # One MXU matmul per layer (K = in_l * degree), f32 accumulation.
        acc = jnp.dot(t_all, w_ref[...], preferred_element_type=jnp.float32)
        # T_0 contribution folded into a broadcast bias add (VPU).
        h = acc + b_ref[...].astype(jnp.float32)

    o_ref[...] = h.astype(o_ref.dtype)


# ----------------------------------------------------------------------------
# Parameter handling
# ----------------------------------------------------------------------------
def init_kan_params(key, input_size, output_size, n_layers, hidden_size, degree):
    """Deterministic init mirroring ChebyshevLayer:
       coeffs ~ Normal(0, 1/(in_dim*(degree+1))), shape (in_dim, out_dim, degree+1)."""
    dims = [(input_size, hidden_size)]
    dims += [(hidden_size, hidden_size)] * n_layers
    dims += [(hidden_size, output_size)]

    params = []
    keys = jax.random.split(key, len(dims))
    for k, (din, dout) in zip(keys, dims):
        std = 1.0 / (din * (degree + 1))
        params.append(std * jax.random.normal(k, (din, dout, degree + 1),
                                              dtype=jnp.float32))
    return params


def pack_kan_params(coeffs_list, degree, *, compute_dtype=jnp.bfloat16):
    """Repack per-layer coefficients (in, out, degree+1) into kernel form:
         W_flat[(d-1)*in + i, o] = C[i, o, d]  for d = 1..degree   (shape (in*degree, out))
         bias[0, o]              = sum_i C[i, o, 0]
       The final layer's output dim is zero-padded to a multiple of 128 lanes (lane-dense
       HBM store); padded W columns AND bias entries are zero, so padding is inert.
       compute_dtype defaults to bfloat16 (MXU-native on v5e/v6e/v7x, halves weight VMEM);
       pass float32 for bit-exact parity with the torch reference."""
    assert degree >= 1, "Chebyshev degree must be >= 1"
    n = len(coeffs_list)
    out_true = coeffs_list[-1].shape[1]
    out_pad = _round_up(out_true, 128)

    packed = []
    for li, c in enumerate(coeffs_list):
        din, dout, dp1 = c.shape
        assert dp1 == degree + 1
        bias = jnp.sum(c[:, :, 0], axis=0)[None, :]                            # (1, out)
        w = jnp.transpose(c[:, :, 1:], (2, 0, 1)).reshape(degree * din, dout)  # (in*deg, out)
        if li == n - 1 and dout < out_pad:
            w = jnp.pad(w, ((0, 0), (0, out_pad - dout)))
            bias = jnp.pad(bias, ((0, 0), (0, out_pad - dout)))
        packed.append((w.astype(compute_dtype), bias.astype(jnp.float32)))
    return packed, out_true, out_pad


# ----------------------------------------------------------------------------
# Wrapper
# ----------------------------------------------------------------------------
def kan_forward(x, packed_params, degree, output_size, *, max_tile=512,
                activation_dtype=jnp.float32, single_buffer_weights=True):
    """Full KAN forward in a single fused pallas_call. x: (B, input_size) float32.
       max_tile: raise (1024-2048) for large-batch / small-hidden configs on v5e/v6e;
       keep moderate on v7x (64 MiB VMEM). activation_dtype=bfloat16 is safe on v6e/v7x."""
    B, in_dim = x.shape
    num_layers = len(packed_params)
    out_pad = packed_params[-1][0].shape[1]
    w_dtype = packed_params[0][0].dtype
    in_dims = [w.shape[0] // degree for (w, _) in packed_params]
    out_dims = [w.shape[1] for (w, _) in packed_params]
    max_in = max(in_dims)
    max_width = max(max(in_dims), max(out_dims))

    # --- batch tiling: balanced tiles, >= 2 tiles whenever b_pad > 16 so the "parallel"
    #     axis can be split across v7x's two TensorCores. -----------------------------
    b_pad = _round_up(max(B, 8), 8)
    if b_pad <= 16:
        tb = b_pad
    else:
        n_tiles = max(2, _cdiv(b_pad, max_tile))
        tb = _round_up(_cdiv(b_pad, n_tiles), 8)
    b_pad = _round_up(b_pad, tb)
    grid = (b_pad // tb,)
    if b_pad != B:
        x = jnp.pad(x, ((0, b_pad - B), (0, 0)))

    # --- explicit VMEM budget -> scoped limit (weights x buffers + 2x I/O tiles + slab + temps)
    w_bytes = sum(int(w.size) * w.dtype.itemsize + int(b.size) * b.dtype.itemsize
                  for w, b in packed_params)
    w_bufs = 1 if single_buffer_weights else 2
    io_bytes = 2 * tb * in_dim * 4 + 2 * tb * out_pad * 4
    slab_bytes = (tb * degree * max_in * jnp.dtype(w_dtype).itemsize) if degree >= 2 else 0
    act_bytes = 6 * tb * max_width * 4
    estimate = w_bufs * w_bytes + io_bytes + slab_bytes + act_bytes
    vmem_limit = int(min(max(estimate * 3 // 2 + (4 << 20), 32 << 20), 128 << 20))

    flat_inputs = [x]
    for (w, b) in packed_params:
        flat_inputs.extend([w, b])

    kernel = functools.partial(_kan_fused_kernel, degree=degree,
                               num_layers=num_layers,
                               activation_dtype=activation_dtype)

    def _call(use_single_buffer):
        def wspec(shape):
            if use_single_buffer:
                # Grid-invariant weight/bias: single buffer (no pointless double-buffering).
                return pl.BlockSpec(shape, lambda i: (0, 0), pipeline_mode=pl.Buffered(1))
            return pl.BlockSpec(shape, lambda i: (0, 0))

        in_specs = [pl.BlockSpec((tb, in_dim), lambda i: (i, 0))]
        for (w, b) in packed_params:
            in_specs.append(wspec(w.shape))
            in_specs.append(wspec(b.shape))

        scratch_shapes = []
        if degree >= 2:
            scratch_shapes.append(pltpu.VMEM((tb, degree * max_in), w_dtype))

        return pl.pallas_call(
            kernel,
            out_shape=jax.ShapeDtypeStruct((b_pad, out_pad), jnp.float32),
            grid_spec=pltpu.PrefetchScalarGridSpec(
                num_scalar_prefetch=0,
                grid=grid,
                in_specs=in_specs,
                out_specs=pl.BlockSpec((tb, out_pad), lambda i: (i, 0)),
                scratch_shapes=scratch_shapes,
            ),
            compiler_params=pltpu.CompilerParams(
                dimension_semantics=("parallel",),
                vmem_limit_bytes=vmem_limit),
        )(*flat_inputs)

    if single_buffer_weights:
        try:
            y_pad = _call(True)
        except Exception:
            # Graceful fallback if this jax build rejects Buffered(1) on pallas_call specs.
            y_pad = _call(False)
    else:
        y_pad = _call(False)

    return y_pad[:B, :output_size]


# ----------------------------------------------------------------------------
# Pure-JAX reference (mirrors the torch ChebyshevLayer / KAN.forward)
# ----------------------------------------------------------------------------
def _cheby_layer_ref(x, c_iod, degree):
    xt = jnp.tanh(x)
    T = [jnp.ones_like(xt)]
    if degree >= 1:
        T.append(xt)
    for _ in range(2, degree + 1):
        T.append(2.0 * xt * T[-1] - T[-2])
    cheby = jnp.stack(T, axis=-1)                     # (B, in, degree+1)
    return jnp.einsum("bid,iod->bo", cheby, c_iod)


def _kan_forward_ref(x, coeffs_list, degree):
    for c in coeffs_list:
        x = _cheby_layer_ref(x, c, degree)
    return x


if __name__ == "__main__":
    # Small, deterministic configuration consistent with the module's __init__.
    input_size, output_size = 4, 3
    n_layers, hidden_size = 2, 32
    degree = 3
    batch = 40   # > 16 -> forces two balanced batch tiles (exercises the v7x 2-TC path + padding)

    key = jax.random.PRNGKey(0)
    k_params, k_x = jax.random.split(key)

    coeffs = init_kan_params(k_params, input_size, output_size,
                             n_layers, hidden_size, degree)
    x = jax.random.normal(k_x, (batch, input_size), dtype=jnp.float32)
    y_ref = _kan_forward_ref(x, coeffs, degree)

    # 1) f32 weights: exact-parity path vs the reference.
    packed_f32, out_true, _ = pack_kan_params(coeffs, degree, compute_dtype=jnp.float32)
    y32 = jax.block_until_ready(kan_forward(x, packed_f32, degree, out_true))
    assert y32.shape == (batch, output_size)
    assert jnp.allclose(y32, y_ref, atol=2e-5, rtol=1e-4), "Pallas KAN (f32) mismatch vs reference"

    # 2) bf16 weights (default production packing): loose tolerance.
    packed_bf16, out_true, _ = pack_kan_params(coeffs, degree)   # compute_dtype=bfloat16
    y16 = jax.block_until_ready(kan_forward(x, packed_bf16, degree, out_true))
    assert y16.shape == (batch, output_size)
    assert jnp.allclose(y16, y_ref, atol=1e-2, rtol=1e-1), "Pallas KAN (bf16 weights) mismatch vs reference"

    print("KERNEL_OK")
</pallas_src>

<mosaic_0001>
module attributes {stable_mosaic.version = 11 : i64} {
  func.func @_kan_fused_kernel(%arg0: i32, %arg1: memref<24x4xf32, #tpu.memory_space<vmem>>, %arg2: memref<12x32xf32, #tpu.memory_space<vmem>>, %arg3: memref<1x32xf32, #tpu.memory_space<vmem>>, %arg4: memref<96x32xf32, #tpu.memory_space<vmem>>, %arg5: memref<1x32xf32, #tpu.memory_space<vmem>>, %arg6: memref<96x32xf32, #tpu.memory_space<vmem>>, %arg7: memref<1x32xf32, #tpu.memory_space<vmem>>, %arg8: memref<96x128xf32, #tpu.memory_space<vmem>>, %arg9: memref<1x128xf32, #tpu.memory_space<vmem>>, %arg10: memref<24x128xf32, #tpu.memory_space<vmem>>, %arg11: memref<24x96xf32, #tpu.memory_space<vmem>>) attributes {dimension_semantics = [#tpu.dimension_semantics<parallel>], iteration_bounds = array<i64: 2>, scalar_prefetch = 0 : i64, scratch_operands = 1 : i64, tpu.core_type = #tpu.core_type<tc>, window_params = [{transform_indices = @transform_0, window_bounds = array<i64: 24, 4>}, {pipeline_mode = #tpu.pipeline_mode<synchronous>, transform_indices = @transform_1, window_bounds = array<i64: 12, 32>}, {pipeline_mode = #tpu.pipeline_mode<synchronous>, transform_indices = @transform_2, window_bounds = array<i64: 1, 32>}, {pipeline_mode = #tpu.pipeline_mode<synchronous>, transform_indices = @transform_3, window_bounds = array<i64: 96, 32>}, {pipeline_mode = #tpu.pipeline_mode<synchronous>, transform_indices = @transform_4, window_bounds = array<i64: 1, 32>}, {pipeline_mode = #tpu.pipeline_mode<synchronous>, transform_indices = @transform_5, window_bounds = array<i64: 96, 32>}, {pipeline_mode = #tpu.pipeline_mode<synchronous>, transform_indices = @transform_6, window_bounds = array<i64: 1, 32>}, {pipeline_mode = #tpu.pipeline_mode<synchronous>, transform_indices = @transform_7, window_bounds = array<i64: 96, 128>}, {pipeline_mode = #tpu.pipeline_mode<synchronous>, transform_indices = @transform_8, window_bounds = array<i64: 1, 128>}, {transform_indices = @transform_9, window_bounds = array<i64: 24, 128>}]} {
    %c0 = arith.constant 0 : index
    %c0_0 = arith.constant 0 : index
    %0 = vector.load %arg1[%c0, %c0_0] : memref<24x4xf32, #tpu.memory_space<vmem>>, vector<24x4xf32>
    %1 = math.tanh %0 : vector<24x4xf32>
    %c0_1 = arith.constant 0 : index
    %c0_2 = arith.constant 0 : index
    %2 = vector.load %arg11[%c0_1, %c0_2] : memref<24x96xf32, #tpu.memory_space<vmem>>, vector<24x4xf32>
    tpu.vector_store %arg11[%c0_1, %c0_2], %1 {strides = array<i32>} : memref<24x96xf32, #tpu.memory_space<vmem>>, vector<24x4xf32>,
    %3 = arith.addf %1, %1 : vector<24x4xf32>
    %cst = arith.constant 1.000000e+00 : f32
    %4 = vector.broadcast %cst : f32 to vector<24x4xf32>
    %5 = arith.mulf %3, %1 : vector<24x4xf32>
    %6 = arith.subf %5, %4 : vector<24x4xf32>
    %c0_3 = arith.constant 0 : index
    %c4 = arith.constant 4 : index
    %7 = vector.load %arg11[%c0_3, %c4] : memref<24x96xf32, #tpu.memory_space<vmem>>, vector<24x4xf32>
    tpu.vector_store %arg11[%c0_3, %c4], %6 {strides = array<i32>} : memref<24x96xf32, #tpu.memory_space<vmem>>, vector<24x4xf32>,
    %8 = arith.mulf %3, %6 : vector<24x4xf32>
    %9 = arith.subf %8, %1 : vector<24x4xf32>
    %c0_4 = arith.constant 0 : index
    %c8 = arith.constant 8 : index
    %10 = vector.load %arg11[%c0_4, %c8] : memref<24x96xf32, #tpu.memory_space<vmem>>, vector<24x4xf32>
    tpu.vector_store %arg11[%c0_4, %c8], %9 {strides = array<i32>} : memref<24x96xf32, #tpu.memory_space<vmem>>, vector<24x4xf32>,
    %c0_5 = arith.constant 0 : index
    %c0_6 = arith.constant 0 : index
    %11 = vector.load %arg11[%c0_5, %c0_6] : memref<24x96xf32, #tpu.memory_space<vmem>>, vector<24x12xf32>
    %c0_7 = arith.constant 0 : index
    %c0_8 = arith.constant 0 : index
    %12 = vector.load %arg2[%c0_7, %c0_8] : memref<12x32xf32, #tpu.memory_space<vmem>>, vector<12x32xf32>
    %cst_9 = arith.constant dense<0.000000e+00> : vector<24x32xf32>
    %13 = tpu.matmul %11, %12, %cst_9 {dimension_numbers = #tpu.dot_dimension_numbers<[1], [0], [0], [1], [0, 0, 1, 1], [], []>} : vector<24x12xf32>, vector<12x32xf32>, vector<24x32xf32> -> vector<24x32xf32>
    %c0_10 = arith.constant 0 : index
    %c0_11 = arith.constant 0 : index
    %14 = vector.load %arg3[%c0_10, %c0_11] : memref<1x32xf32, #tpu.memory_space<vmem>>, vector<1x32xf32>
    %15 = vector.broadcast %14 : vector<1x32xf32> to vector<24x32xf32>
    %16 = arith.addf %13, %15 : vector<24x32xf32>
    %17 = math.tanh %16 : vector<24x32xf32>
    %c0_12 = arith.constant 0 : index
    %c0_13 = arith.constant 0 : index
    %18 = vector.load %arg11[%c0_12, %c0_13] : memref<24x96xf32, #tpu.memory_space<vmem>>, vector<24x32xf32>
    tpu.vector_store %arg11[%c0_12, %c0_13], %17 {strides = array<i32>} : memref<24x96xf32, #tpu.memory_space<vmem>>, vector<24x32xf32>,
    %19 = arith.addf %17, %17 : vector<24x32xf32>
    %cst_14 = arith.constant 1.000000e+00 : f32
    %20 = vector.broadcast %cst_14 : f32 to vector<24x32xf32>
    %21 = arith.mulf %19, %17 : vector<24x32xf32>
    %22 = arith.subf %21, %20 : vector<24x32xf32>
    %c0_15 = arith.constant 0 : index
    %c32 = arith.constant 32 : index
    %23 = vector.load %arg11[%c0_15, %c32] : memref<24x96xf32, #tpu.memory_space<vmem>>, vector<24x32xf32>
    tpu.vector_store %arg11[%c0_15, %c32], %22 {strides = array<i32>} : memref<24x96xf32, #tpu.memory_space<vmem>>, vector<24x32xf32>,
    %24 = arith.mulf %19, %22 : vector<24x32xf32>
    %25 = arith.subf %24, %17 : vector<24x32xf32>
    %c0_16 = arith.constant 0 : index
    %c64 = arith.constant 64 : index
    %26 = vector.load %arg11[%c0_16, %c64] : memref<24x96xf32, #tpu.memory_space<vmem>>, vector<24x32xf32>
    tpu.vector_store %arg11[%c0_16, %c64], %25 {strides = array<i32>} : memref<24x96xf32, #tpu.memory_space<vmem>>, vector<24x32xf32>,
    %c0_17 = arith.constant 0 : index
    %c0_18 = arith.constant 0 : index
    %27 = vector.load %arg11[%c0_17, %c0_18] : memref<24x96xf32, #tpu.memory_space<vmem>>, vector<24x96xf32>
    %c0_19 = arith.constant 0 : index
    %c0_20 = arith.constant 0 : index
    %28 = vector.load %arg4[%c0_19, %c0_20] : memref<96x32xf32, #tpu.memory_space<vmem>>, vector<96x32xf32>
    %cst_21 = arith.constant dense<0.000000e+00> : vector<24x32xf32>
    %29 = tpu.matmul %27, %28, %cst_21 {dimension_numbers = #tpu.dot_dimension_numbers<[1], [0], [0], [1], [0, 0, 1, 1], [], []>} : vector<24x96xf32>, vector<96x32xf32>, vector<24x32xf32> -> vector<24x32xf32>
    %c0_22 = arith.constant 0 : index
    %c0_23 = arith.constant 0 : index
    %30 = vector.load %arg5[%c0_22, %c0_23] : memref<1x32xf32, #tpu.memory_space<vmem>>, vector<1x32xf32>
    %31 = vector.broadcast %30 : vector<1x32xf32> to vector<24x32xf32>
    %32 = arith.addf %29, %31 : vector<24x32xf32>
    %33 = math.tanh %32 : vector<24x32xf32>
    %c0_24 = arith.constant 0 : index
    %c0_25 = arith.constant 0 : index
    %34 = vector.load %arg11[%c0_24, %c0_25] : memref<24x96xf32, #tpu.memory_space<vmem>>, vector<24x32xf32>
    tpu.vector_store %arg11[%c0_24, %c0_25], %33 {strides = array<i32>} : memref<24x96xf32, #tpu.memory_space<vmem>>, vector<24x32xf32>,
    %35 = arith.addf %33, %33 : vector<24x32xf32>
    %cst_26 = arith.constant 1.000000e+00 : f32
    %36 = vector.broadcast %cst_26 : f32 to vector<24x32xf32>
    %37 = arith.mulf %35, %33 : vector<24x32xf32>
    %38 = arith.subf %37, %36 : vector<24x32xf32>
    %c0_27 = arith.constant 0 : index
    %c32_28 = arith.constant 32 : index
    %39 = vector.load %arg11[%c0_27, %c32_28] : memref<24x96xf32, #tpu.memory_space<vmem>>, vector<24x32xf32>
    tpu.vector_store %arg11[%c0_27, %c32_28], %38 {strides = array<i32>} : memref<24x96xf32, #tpu.memory_space<vmem>>, vector<24x32xf32>,
    %40 = arith.mulf %35, %38 : vector<24x32xf32>
    %41 = arith.subf %40, %33 : vector<24x32xf32>
    %c0_29 = arith.constant 0 : index
    %c64_30 = arith.constant 64 : index
    %42 = vector.load %arg11[%c0_29, %c64_30] : memref<24x96xf32, #tpu.memory_space<vmem>>, vector<24x32xf32>
    tpu.vector_store %arg11[%c0_29, %c64_30], %41 {strides = array<i32>} : memref<24x96xf32, #tpu.memory_space<vmem>>, vector<24x32xf32>,
    %c0_31 = arith.constant 0 : index
    %c0_32 = arith.constant 0 : index
    %43 = vector.load %arg11[%c0_31, %c0_32] : memref<24x96xf32, #tpu.memory_space<vmem>>, vector<24x96xf32>
    %c0_33 = arith.constant 0 : index
    %c0_34 = arith.constant 0 : index
    %44 = vector.load %arg6[%c0_33, %c0_34] : memref<96x32xf32, #tpu.memory_space<vmem>>, vector<96x32xf32>
    %cst_35 = arith.constant dense<0.000000e+00> : vector<24x32xf32>
    %45 = tpu.matmul %43, %44, %cst_35 {dimension_numbers = #tpu.dot_dimension_numbers<[1], [0], [0], [1], [0, 0, 1, 1], [], []>} : vector<24x96xf32>, vector<96x32xf32>, vector<24x32xf32> -> vector<24x32xf32>
    %c0_36 = arith.constant 0 : index
    %c0_37 = arith.constant 0 : index
    %46 = vector.load %arg7[%c0_36, %c0_37] : memref<1x32xf32, #tpu.memory_space<vmem>>, vector<1x32xf32>
    %47 = vector.broadcast %46 : vector<1x32xf32> to vector<24x32xf32>
    %48 = arith.addf %45, %47 : vector<24x32xf32>
    %49 = math.tanh %48 : vector<24x32xf32>
    %c0_38 = arith.constant 0 : index
    %c0_39 = arith.constant 0 : index
    %50 = vector.load %arg11[%c0_38, %c0_39] : memref<24x96xf32, #tpu.memory_space<vmem>>, vector<24x32xf32>
    tpu.vector_store %arg11[%c0_38, %c0_39], %49 {strides = array<i32>} : memref<24x96xf32, #tpu.memory_space<vmem>>, vector<24x32xf32>,
    %51 = arith.addf %49, %49 : vector<24x32xf32>
    %cst_40 = arith.constant 1.000000e+00 : f32
    %52 = vector.broadcast %cst_40 : f32 to vector<24x32xf32>
    %53 = arith.mulf %51, %49 : vector<24x32xf32>
    %54 = arith.subf %53, %52 : vector<24x32xf32>
    %c0_41 = arith.constant 0 : index
    %c32_42 = arith.constant 32 : index
    %55 = vector.load %arg11[%c0_41, %c32_42] : memref<24x96xf32, #tpu.memory_space<vmem>>, vector<24x32xf32>
    tpu.vector_store %arg11[%c0_41, %c32_42], %54 {strides = array<i32>} : memref<24x96xf32, #tpu.memory_space<vmem>>, vector<24x32xf32>,
    %56 = arith.mulf %51, %54 : vector<24x32xf32>
    %57 = arith.subf %56, %49 : vector<24x32xf32>
    %c0_43 = arith.constant 0 : index
    %c64_44 = arith.constant 64 : index
    %58 = vector.load %arg11[%c0_43, %c64_44] : memref<24x96xf32, #tpu.memory_space<vmem>>, vector<24x32xf32>
    tpu.vector_store %arg11[%c0_43, %c64_44], %57 {strides = array<i32>} : memref<24x96xf32, #tpu.memory_space<vmem>>, vector<24x32xf32>,
    %c0_45 = arith.constant 0 : index
    %c0_46 = arith.constant 0 : index
    %59 = vector.load %arg11[%c0_45, %c0_46] : memref<24x96xf32, #tpu.memory_space<vmem>>, vector<24x96xf32>
    %c0_47 = arith.constant 0 : index
    %c0_48 = arith.constant 0 : index
    %60 = vector.load %arg8[%c0_47, %c0_48] : memref<96x128xf32, #tpu.memory_space<vmem>>, vector<96x128xf32>
    %cst_49 = arith.constant dense<0.000000e+00> : vector<24x128xf32>
    %61 = tpu.matmul %59, %60, %cst_49 {dimension_numbers = #tpu.dot_dimension_numbers<[1], [0], [0], [1], [0, 0, 1, 1], [], []>} : vector<24x96xf32>, vector<96x128xf32>, vector<24x128xf32> -> vector<24x128xf32>
    %c0_50 = arith.constant 0 : index
    %c0_51 = arith.constant 0 : index
    %62 = vector.load %arg9[%c0_50, %c0_51] : memref<1x128xf32, #tpu.memory_space<vmem>>, vector<1x128xf32>
    %63 = vector.broadcast %62 : vector<1x128xf32> to vector<24x128xf32>
    %64 = arith.addf %61, %63 : vector<24x128xf32>
    %c0_52 = arith.constant 0 : index
    %c0_53 = arith.constant 0 : index
    %65 = vector.load %arg10[%c0_52, %c0_53] : memref<24x128xf32, #tpu.memory_space<vmem>>, vector<24x128xf32>
    tpu.vector_store %arg10[%c0_52, %c0_53], %64 {strides = array<i32>} : memref<24x128xf32, #tpu.memory_space<vmem>>, vector<24x128xf32>,
    return
  }
  func.func @transform_0(%arg0: i32) -> (i32, i32) {
    %c0_i32 = arith.constant 0 : i32
    %c0_i32_0 = arith.constant 0 : i32
    return %arg0, %c0_i32 : i32, i32
  }
  func.func @transform_1(%arg0: i32) -> (i32, i32) {
    %c0_i32 = arith.constant 0 : i32
    %c0_i32_0 = arith.constant 0 : i32
    %c0_i32_1 = arith.constant 0 : i32
    return %c0_i32, %c0_i32_0 : i32, i32
  }
  func.func @transform_2(%arg0: i32) -> (i32, i32) {
    %c0_i32 = arith.constant 0 : i32
    %c0_i32_0 = arith.constant 0 : i32
    %c0_i32_1 = arith.constant 0 : i32
    return %c0_i32, %c0_i32_0 : i32, i32
  }
  func.func @transform_3(%arg0: i32) -> (i32, i32) {
    %c0_i32 = arith.constant 0 : i32
    %c0_i32_0 = arith.constant 0 : i32
    %c0_i32_1 = arith.constant 0 : i32
    return %c0_i32, %c0_i32_0 : i32, i32
  }
  func.func @transform_4(%arg0: i32) -> (i32, i32) {
    %c0_i32 = arith.constant 0 : i32
    %c0_i32_0 = arith.constant 0 : i32
    %c0_i32_1 = arith.constant 0 : i32
    return %c0_i32, %c0_i32_0 : i32, i32
  }
  func.func @transform_5(%arg0: i32) -> (i32, i32) {
    %c0_i32 = arith.constant 0 : i32
    %c0_i32_0 = arith.constant 0 : i32
    %c0_i32_1 = arith.constant 0 : i32
    return %c0_i32, %c0_i32_0 : i32, i32
  }
  func.func @transform_6(%arg0: i32) -> (i32, i32) {
    %c0_i32 = arith.constant 0 : i32
    %c0_i32_0 = arith.constant 0 : i32
    %c0_i32_1 = arith.constant 0 : i32
    return %c0_i32, %c0_i32_0 : i32, i32
  }
  func.func @transform_7(%arg0: i32) -> (i32, i32) {
    %c0_i32 = arith.constant 0 : i32
    %c0_i32_0 = arith.constant 0 : i32
    %c0_i32_1 = arith.constant 0 : i32
    return %c0_i32, %c0_i32_0 : i32, i32
  }
  func.func @transform_8(%arg0: i32) -> (i32, i32) {
    %c0_i32 = arith.constant 0 : i32
    %c0_i32_0 = arith.constant 0 : i32
    %c0_i32_1 = arith.constant 0 : i32
    return %c0_i32, %c0_i32_0 : i32, i32
  }
  func.func @transform_9(%arg0: i32) -> (i32, i32) {
    %c0_i32 = arith.constant 0 : i32
    %c0_i32_0 = arith.constant 0 : i32
    return %arg0, %c0_i32 : i32, i32
  }
}

module attributes {stable_mosaic.version = 11 : i64} {
  func.func @_kan_fused_kernel(%arg0: i32, %arg1: memref<24x4xf32, #tpu.memory_space<vmem>>, %arg2: memref<12x32xf32, #tpu.memory_space<vmem>>, %arg3: memref<1x32xf32, #tpu.memory_space<vmem>>, %arg4: memref<96x32xf32, #tpu.memory_space<vmem>>, %arg5: memref<1x32xf32, #tpu.memory_space<vmem>>, %arg6: memref<96x32xf32, #tpu.memory_space<vmem>>, %arg7: memref<1x32xf32, #tpu.memory_space<vmem>>, %arg8: memref<96x128xf32, #tpu.memory_space<vmem>>, %arg9: memref<1x128xf32, #tpu.memory_space<vmem>>, %arg10: memref<24x128xf32, #tpu.memory_space<vmem>>, %arg11: memref<24x96xf32, #tpu.memory_space<vmem>>) attributes {dimension_semantics = [#tpu.dimension_semantics<parallel>], iteration_bounds = array<i64: 2>, scalar_prefetch = 0 : i64, scratch_operands = 1 : i64, tpu.core_type = #tpu.core_type<tc>, window_params = [{transform_indices = @transform_0, window_bounds = array<i64: 24, 4>}, {pipeline_mode = #tpu.pipeline_mode<synchronous>, transform_indices = @transform_1, window_bounds = array<i64: 12, 32>}, {pipeline_mode = #tpu.pipeline_mode<synchronous>, transform_indices = @transform_2, window_bounds = array<i64: 1, 32>}, {pipeline_mode = #tpu.pipeline_mode<synchronous>, transform_indices = @transform_3, window_bounds = array<i64: 96, 32>}, {pipeline_mode = #tpu.pipeline_mode<synchronous>, transform_indices = @transform_4, window_bounds = array<i64: 1, 32>}, {pipeline_mode = #tpu.pipeline_mode<synchronous>, transform_indices = @transform_5, window_bounds = array<i64: 96, 32>}, {pipeline_mode = #tpu.pipeline_mode<synchronous>, transform_indices = @transform_6, window_bounds = array<i64: 1, 32>}, {pipeline_mode = #tpu.pipeline_mode<synchronous>, transform_indices = @transform_7, window_bounds = array<i64: 96, 128>}, {pipeline_mode = #tpu.pipeline_mode<synchronous>, transform_indices = @transform_8, window_bounds = array<i64: 1, 128>}, {transform_indices = @transform_9, window_bounds = array<i64: 24, 128>}]} {
    %c0 = arith.constant 0 : index
    %c0_0 = arith.constant 0 : index
    %0 = vector.load %arg1[%c0, %c0_0] : memref<24x4xf32, #tpu.memory_space<vmem>>, vector<24x4xf32>
    %1 = math.tanh %0 : vector<24x4xf32>
    %c0_1 = arith.constant 0 : index
    %c0_2 = arith.constant 0 : index
    %2 = vector.load %arg11[%c0_1, %c0_2] : memref<24x96xf32, #tpu.memory_space<vmem>>, vector<24x4xf32>
    tpu.vector_store %arg11[%c0_1, %c0_2], %1 {strides = array<i32>} : memref<24x96xf32, #tpu.memory_space<vmem>>, vector<24x4xf32>,
    %3 = arith.addf %1, %1 : vector<24x4xf32>
    %cst = arith.constant 1.000000e+00 : f32
    %4 = vector.broadcast %cst : f32 to vector<24x4xf32>
    %5 = arith.mulf %3, %1 : vector<24x4xf32>
    %6 = arith.subf %5, %4 : vector<24x4xf32>
    %c0_3 = arith.constant 0 : index
    %c4 = arith.constant 4 : index
    %7 = vector.load %arg11[%c0_3, %c4] : memref<24x96xf32, #tpu.memory_space<vmem>>, vector<24x4xf32>
    tpu.vector_store %arg11[%c0_3, %c4], %6 {strides = array<i32>} : memref<24x96xf32, #tpu.memory_space<vmem>>, vector<24x4xf32>,
    %8 = arith.mulf %3, %6 : vector<24x4xf32>
    %9 = arith.subf %8, %1 : vector<24x4xf32>
    %c0_4 = arith.constant 0 : index
    %c8 = arith.constant 8 : index
    %10 = vector.load %arg11[%c0_4, %c8] : memref<24x96xf32, #tpu.memory_space<vmem>>, vector<24x4xf32>
    tpu.vector_store %arg11[%c0_4, %c8], %9 {strides = array<i32>} : memref<24x96xf32, #tpu.memory_space<vmem>>, vector<24x4xf32>,
    %c0_5 = arith.constant 0 : index
    %c0_6 = arith.constant 0 : index
    %11 = vector.load %arg11[%c0_5, %c0_6] : memref<24x96xf32, #tpu.memory_space<vmem>>, vector<24x12xf32>
    %c0_7 = arith.constant 0 : index
    %c0_8 = arith.constant 0 : index
    %12 = vector.load %arg2[%c0_7, %c0_8] : memref<12x32xf32, #tpu.memory_space<vmem>>, vector<12x32xf32>
    %cst_9 = arith.constant dense<0.000000e+00> : vector<24x32xf32>
    %13 = tpu.matmul %11, %12, %cst_9 {dimension_numbers = #tpu.dot_dimension_numbers<[1], [0], [0], [1], [0, 0, 1, 1], [], []>} : vector<24x12xf32>, vector<12x32xf32>, vector<24x32xf32> -> vector<24x32xf32>
    %c0_10 = arith.constant 0 : index
    %c0_11 = arith.constant 0 : index
    %14 = vector.load %arg3[%c0_10, %c0_11] : memref<1x32xf32, #tpu.memory_space<vmem>>, vector<1x32xf32>
    %15 = vector.broadcast %14 : vector<1x32xf32> to vector<24x32xf32>
    %16 = arith.addf %13, %15 : vector<24x32xf32>
    %17 = math.tanh %16 : vector<24x32xf32>
    %c0_12 = arith.constant 0 : index
    %c0_13 = arith.constant 0 : index
    %18 = vector.load %arg11[%c0_12, %c0_13] : memref<24x96xf32, #tpu.memory_space<vmem>>, vector<24x32xf32>
    tpu.vector_store %arg11[%c0_12, %c0_13], %17 {strides = array<i32>} : memref<24x96xf32, #tpu.memory_space<vmem>>, vector<24x32xf32>,
    %19 = arith.addf %17, %17 : vector<24x32xf32>
    %cst_14 = arith.constant 1.000000e+00 : f32
    %20 = vector.broadcast %cst_14 : f32 to vector<24x32xf32>
    %21 = arith.mulf %19, %17 : vector<24x32xf32>
    %22 = arith.subf %21, %20 : vector<24x32xf32>
    %c0_15 = arith.constant 0 : index
    %c32 = arith.constant 32 : index
    %23 = vector.load %arg11[%c0_15, %c32] : memref<24x96xf32, #tpu.memory_space<vmem>>, vector<24x32xf32>
    tpu.vector_store %arg11[%c0_15, %c32], %22 {strides = array<i32>} : memref<24x96xf32, #tpu.memory_space<vmem>>, vector<24x32xf32>,
    %24 = arith.mulf %19, %22 : vector<24x32xf32>
    %25 = arith.subf %24, %17 : vector<24x32xf32>
    %c0_16 = arith.constant 0 : index
    %c64 = arith.constant 64 : index
    %26 = vector.load %arg11[%c0_16, %c64] : memref<24x96xf32, #tpu.memory_space<vmem>>, vector<24x32xf32>
    tpu.vector_store %arg11[%c0_16, %c64], %25 {strides = array<i32>} : memref<24x96xf32, #tpu.memory_space<vmem>>, vector<24x32xf32>,
    %c0_17 = arith.constant 0 : index
    %c0_18 = arith.constant 0 : index
    %27 = vector.load %arg11[%c0_17, %c0_18] : memref<24x96xf32, #tpu.memory_space<vmem>>, vector<24x96xf32>
    %c0_19 = arith.constant 0 : index
    %c0_20 = arith.constant 0 : index
    %28 = vector.load %arg4[%c0_19, %c0_20] : memref<96x32xf32, #tpu.memory_space<vmem>>, vector<96x32xf32>
    %cst_21 = arith.constant dense<0.000000e+00> : vector<24x32xf32>
    %29 = tpu.matmul %27, %28, %cst_21 {dimension_numbers = #tpu.dot_dimension_numbers<[1], [0], [0], [1], [0, 0, 1, 1], [], []>} : vector<24x96xf32>, vector<96x32xf32>, vector<24x32xf32> -> vector<24x32xf32>
    %c0_22 = arith.constant 0 : index
    %c0_23 = arith.constant 0 : index
    %30 = vector.load %arg5[%c0_22, %c0_23] : memref<1x32xf32, #tpu.memory_space<vmem>>, vector<1x32xf32>
    %31 = vector.broadcast %30 : vector<1x32xf32> to vector<24x32xf32>
    %32 = arith.addf %29, %31 : vector<24x32xf32>
    %33 = math.tanh %32 : vector<24x32xf32>
    %c0_24 = arith.constant 0 : index
    %c0_25 = arith.constant 0 : index
    %34 = vector.load %arg11[%c0_24, %c0_25] : memref<24x96xf32, #tpu.memory_space<vmem>>, vector<24x32xf32>
    tpu.vector_store %arg11[%c0_24, %c0_25], %33 {strides = array<i32>} : memref<24x96xf32, #tpu.memory_space<vmem>>, vector<24x32xf32>,
    %35 = arith.addf %33, %33 : vector<24x32xf32>
    %cst_26 = arith.constant 1.000000e+00 : f32
    %36 = vector.broadcast %cst_26 : f32 to vector<24x32xf32>
    %37 = arith.mulf %35, %33 : vector<24x32xf32>
    %38 = arith.subf %37, %36 : vector<24x32xf32>
    %c0_27 = arith.constant 0 : index
    %c32_28 = arith.constant 32 : index
    %39 = vector.load %arg11[%c0_27, %c32_28] : memref<24x96xf32, #tpu.memory_space<vmem>>, vector<24x32xf32>
    tpu.vector_store %arg11[%c0_27, %c32_28], %38 {strides = array<i32>} : memref<24x96xf32, #tpu.memory_space<vmem>>, vector<24x32xf32>,
    %40 = arith.mulf %35, %38 : vector<24x32xf32>
    %41 = arith.subf %40, %33 : vector<24x32xf32>
    %c0_29 = arith.constant 0 : index
    %c64_30 = arith.constant 64 : index
    %42 = vector.load %arg11[%c0_29, %c64_30] : memref<24x96xf32, #tpu.memory_space<vmem>>, vector<24x32xf32>
    tpu.vector_store %arg11[%c0_29, %c64_30], %41 {strides = array<i32>} : memref<24x96xf32, #tpu.memory_space<vmem>>, vector<24x32xf32>,
    %c0_31 = arith.constant 0 : index
    %c0_32 = arith.constant 0 : index
    %43 = vector.load %arg11[%c0_31, %c0_32] : memref<24x96xf32, #tpu.memory_space<vmem>>, vector<24x96xf32>
    %c0_33 = arith.constant 0 : index
    %c0_34 = arith.constant 0 : index
    %44 = vector.load %arg6[%c0_33, %c0_34] : memref<96x32xf32, #tpu.memory_space<vmem>>, vector<96x32xf32>
    %cst_35 = arith.constant dense<0.000000e+00> : vector<24x32xf32>
    %45 = tpu.matmul %43, %44, %cst_35 {dimension_numbers = #tpu.dot_dimension_numbers<[1], [0], [0], [1], [0, 0, 1, 1], [], []>} : vector<24x96xf32>, vector<96x32xf32>, vector<24x32xf32> -> vector<24x32xf32>
    %c0_36 = arith.constant 0 : index
    %c0_37 = arith.constant 0 : index
    %46 = vector.load %arg7[%c0_36, %c0_37] : memref<1x32xf32, #tpu.memory_space<vmem>>, vector<1x32xf32>
    %47 = vector.broadcast %46 : vector<1x32xf32> to vector<24x32xf32>
    %48 = arith.addf %45, %47 : vector<24x32xf32>
    %49 = math.tanh %48 : vector<24x32xf32>
    %c0_38 = arith.constant 0 : index
    %c0_39 = arith.constant 0 : index
    %50 = vector.load %arg11[%c0_38, %c0_39] : memref<24x96xf32, #tpu.memory_space<vmem>>, vector<24x32xf32>
    tpu.vector_store %arg11[%c0_38, %c0_39], %49 {strides = array<i32>} : memref<24x96xf32, #tpu.memory_space<vmem>>, vector<24x32xf32>,
    %51 = arith.addf %49, %49 : vector<24x32xf32>
    %cst_40 = arith.constant 1.000000e+00 : f32
    %52 = vector.broadcast %cst_40 : f32 to vector<24x32xf32>
    %53 = arith.mulf %51, %49 : vector<24x32xf32>
    %54 = arith.subf %53, %52 : vector<24x32xf32>
    %c0_41 = arith.constant 0 : index
    %c32_42 = arith.constant 32 : index
    %55 = vector.load %arg11[%c0_41, %c32_42] : memref<24x96xf32, #tpu.memory_space<vmem>>, vector<24x32xf32>
    tpu.vector_store %arg11[%c0_41, %c32_42], %54 {strides = array<i32>} : memref<24x96xf32, #tpu.memory_space<vmem>>, vector<24x32xf32>,
    %56 = arith.mulf %51, %54 : vector<24x32xf32>
    %57 = arith.subf %56, %49 : vector<24x32xf32>
    %c0_43 = arith.constant 0 : index
    %c64_44 = arith.constant 64 : index
    %58 = vector.load %arg11[%c0_43, %c64_44] : memref<24x96xf32, #tpu.memory_space<vmem>>, vector<24x32xf32>
    tpu.vector_store %arg11[%c0_43, %c64_44], %57 {strides = array<i32>} : memref<24x96xf32, #tpu.memory_space<vmem>>, vector<24x32xf32>,
    %c0_45 = arith.constant 0 : index
    %c0_46 = arith.constant 0 : index
    %59 = vector.load %arg11[%c0_45, %c0_46] : memref<24x96xf32, #tpu.memory_space<vmem>>, vector<24x96xf32>
    %c0_47 = arith.constant 0 : index
    %c0_48 = arith.constant 0 : index
    %60 = vector.load %arg8[%c0_47, %c0_48] : memref<96x128xf32, #tpu.memory_space<vmem>>, vector<96x128xf32>
    %cst_49 = arith.constant dense<0.000000e+00> : vector<24x128xf32>
    %61 = tpu.matmul %59, %60, %cst_49 {dimension_numbers = #tpu.dot_dimension_numbers<[1], [0], [0], [1], [0, 0, 1, 1], [], []>} : vector<24x96xf32>, vector<96x128xf32>, vector<24x128xf32> -> vector<24x128xf32>
    %c0_50 = arith.constant 0 : index
    %c0_51 = arith.constant 0 : index
    %62 = vector.load %arg9[%c0_50, %c0_51] : memref<1x128xf32, #tpu.memory_space<vmem>>, vector<1x128xf32>
    %63 = vector.broadcast %62 : vector<1x128xf32> to vector<24x128xf32>
    %64 = arith.addf %61, %63 : vector<24x128xf32>
    %c0_52 = arith.constant 0 : index
    %c0_53 = arith.constant 0 : index
    %65 = vector.load %arg10[%c0_52, %c0_53] : memref<24x128xf32, #tpu.memory_space<vmem>>, vector<24x128xf32>
    tpu.vector_store %arg10[%c0_52, %c0_53], %64 {strides = array<i32>} : memref<24x128xf32, #tpu.memory_space<vmem>>, vector<24x128xf32>,
    return
  }
  func.func @transform_0(%arg0: i32) -> (i32, i32) {
    %c0_i32 = arith.constant 0 : i32
    %c0_i32_0 = arith.constant 0 : i32
    return %arg0, %c0_i32 : i32, i32
  }
  func.func @transform_1(%arg0: i32) -> (i32, i32) {
    %c0_i32 = arith.constant 0 : i32
    %c0_i32_0 = arith.constant 0 : i32
    %c0_i32_1 = arith.constant 0 : i32
    return %c0_i32, %c0_i32_0 : i32, i32
  }
  func.func @transform_2(%arg0: i32) -> (i32, i32) {
    %c0_i32 = arith.constant 0 : i32
    %c0_i32_0 = arith.constant 0 : i32
    %c0_i32_1 = arith.constant 0 : i32
    return %c0_i32, %c0_i32_0 : i32, i32
  }
  func.func @transform_3(%arg0: i32) -> (i32, i32) {
    %c0_i32 = arith.constant 0 : i32
    %c0_i32_0 = arith.constant 0 : i32
    %c0_i32_1 = arith.constant 0 : i32
    return %c0_i32, %c0_i32_0 : i32, i32
  }
  func.func @transform_4(%arg0: i32) -> (i32, i32) {
    %c0_i32 = arith.constant 0 : i32
    %c0_i32_0 = arith.constant 0 : i32
    %c0_i32_1 = arith.constant 0 : i32
    return %c0_i32, %c0_i32_0 : i32, i32
  }
  func.func @transform_5(%arg0: i32) -> (i32, i32) {
    %c0_i32 = arith.constant 0 : i32
    %c0_i32_0 = arith.constant 0 : i32
    %c0_i32_1 = arith.constant 0 : i32
    return %c0_i32, %c0_i32_0 : i32, i32
  }
  func.func @transform_6(%arg0: i32) -> (i32, i32) {
    %c0_i32 = arith.constant 0 : i32
    %c0_i32_0 = arith.constant 0 : i32
    %c0_i32_1 = arith.constant 0 : i32
    return %c0_i32, %c0_i32_0 : i32, i32
  }
  func.func @transform_7(%arg0: i32) -> (i32, i32) {
    %c0_i32 = arith.constant 0 : i32
    %c0_i32_0 = arith.constant 0 : i32
    %c0_i32_1 = arith.constant 0 : i32
    return %c0_i32, %c0_i32_0 : i32, i32
  }
  func.func @transform_8(%arg0: i32) -> (i32, i32) {
    %c0_i32 = arith.constant 0 : i32
    %c0_i32_0 = arith.constant 0 : i32
    %c0_i32_1 = arith.constant 0 : i32
    return %c0_i32, %c0_i32_0 : i32, i32
  }
  func.func @transform_9(%arg0: i32) -> (i32, i32) {
    %c0_i32 = arith.constant 0 : i32
    %c0_i32_0 = arith.constant 0 : i32
    return %arg0, %c0_i32 : i32, i32
  }
}

</mosaic_0001>

<bundles_post_ra>
// kernel: tpu_custom_call.1
= control target key start
LH: loop header
LB: loop body
LE: loop exit
PB: predicated region body
PF: predicated region fallthrough
CT: control target
= control target key end

     0   :  { %14 = vsyncpa [#allocation4], 0  ;;  %s1871_s0 = inlined_call_operand.vmem [shape: f32[48,4], index: 0, kind: input, shape index: {}]   ;;  %s1872_s1 = inlined_call_operand.vmem [shape: f32[12,32], index: 1, kind: input, shape index: {}]   ;;  %s1873_s2 = inlined_call_operand.vmem [shape: f32[1,32], index: 2, kind: input, shape index: {}]   ;;  %s1874_s3 = inlined_call_operand.vmem [shape: f32[96,32], index: 3, kind: input, shape index: {}]   ;;  %s1875_s4 = inlined_call_operand.vmem [shape: f32[1,32], index: 4, kind: input, shape index: {}]   ;;  %s1876_s5 = inlined_call_operand.vmem [shape: f32[96,32], index: 5, kind: input, shape index: {}]   ;;  %s1877_s6 = inlined_call_operand.vmem [shape: f32[1,32], index: 6, kind: input, shape index: {}]   ;;  %s1878_s7 = inlined_call_operand.vmem [shape: f32[96,128], index: 7, kind: input, shape index: {}]   ;;  %s1879_s8 = inlined_call_operand.vmem [shape: f32[1,128], index: 8, kind: input, shape index: {}]   ;;  %s1880_s9 = inlined_call_operand.hbm [shape: f32[48,128], index: 9, kind: output, shape index: {}]  }
   0x1   :  { %16 = vsyncpa [#allocation4 + $0x1], 0  ;;  %s1533_s30 = smov 0   ;;  %s1535_s10 = smov 0  }
   0x2   :  { %s1537_s11 = smov 0   ;;  %s1539_s12 = smov 0  }
   0x3 LB: > { %s1554_s13 = sadd.s32 4294967295, %s1471_s12   ;;  %s1066_s14 = sadd.s32 4294967294, %s1471_s12   ;;  %s1471_s12 = sphi %s1539_s12, %s1886_s12   ;;  %s1467_s11 = sphi %s1537_s11, %s1885_s11   ;;  %s1463_s10 = sphi %s1535_s10, %s1884_s10   ;;  %s1459_s30 = sphi %s1533_s30, %s1883_s30  }
   0x4   : > { %s1558_s15 = sadd.s32 1, %s1471_s12   ;;  %s223_s16 = sadd.s32 1, %s1467_s11 }
   0x5   : > { %s220_s17 = ssub.s32 %s1471_s12, %s1558_s15  ;;  %p233_p0 = scmp.ne.s32.totalorder %s1467_s11, %s1463_s10 }
   0x6   : > { %p221_p1 = scmp.eq.s32.totalorder %s220_s17, 0  ;;  %p234_p2 = scmp.eq.s32.totalorder %s1554_s13, 1 }
   0x7   : > { %p239_p3 = scmp.ne.s32.totalorder %s1463_s10, %s1459_s30  ;;  %p240_p4 = scmp.eq.s32.totalorder %s1066_s14, 1 }
   0x8   : > { %s1569_s18 = scalar_select %p221_p1, %s1467_s11, %s223_s16  }
   0x9   : > { %p1571_p5 = por %p234_p2, %p233_p0  ;;  %p1575_p6 = por %p240_p4, %p239_p3 }
   0xa   : > { %p1069_p7 = scmp.ge.s32.totalorder %s1471_s12, 1  ;;  %p291_p8 = scmp.lt.s32.totalorder %s1471_s12, 3 }
   0xc   : > { %p292_p9 = pnand %p1069_p7, %p291_p8 }
   0xd   : > { %s327_s21 = smul.u32 (!%p292_p9), 3, %s1554_s13  ;;  %vm340_vm0 = vcmask (!%p292_p9), 31744   ;;  %v394_v3 = vld [vmem:[%s1872_s1] sm:$0xff] (!%p292_p9)  ;;  %v395_v4 = vld [vmem:[%s1872_s1 + $0x8] sm:$0xf] (!%p292_p9)  ;;  %vm413_vm1 = vcmask (!%p292_p9), 1043456  }
   0xe   : > { %295 = sbr.rel (%p292_p9) target bundleno = 1485 (0x5cd), region = 56  ;;  %v1473_v6 = vmov (!%p292_p9), 0.0|0.0   ;;  %v1267_v7 = vpack.c.bf16 (!%p292_p9), %v395_v4, %v394_v3  ;;  %vm1474_vm2 = vmmov (!%p292_p9), 1   ;;  %vm1475_vm4 = vmmov (!%p292_p9), 0   ;;  %s1477_s14 = smov (!%p292_p9), 4   ;;  %v554_v35 = vld [vmem:[%s1874_s3] sm:$0xff] (!%p292_p9) }
   0xf   : > { %p328_p10 = scmp.lt.s32.totalorder (!%p292_p9), %s327_s21, 5  ;;  %1266 = vmatprep.subr.bf16.mxu0 (!%p292_p9), %v1473_v6  ;;  %vm1268_vm3 = vmpackc.low (!%p292_p9), %vm413_vm1, %vm1474_vm2  ;;  %1270 = vmatprep.subr.bf16.mxu1 (!%p292_p9), %v1473_v6  ;;  %v1476_v14 = vmov (!%p292_p9), 0.0   ;;  %s1478_s16 = smov (!%p292_p9), 8   ;;  %vm365_vm5 = vcmask (!%p292_p9), 64544   ;;  %vm387_vm6 = vcmask (!%p292_p9), 97344   ;;  %vm403_vm7 = vcmask (!%p292_p9), 97280  }
  0x10   : > { %1269 = vmatpush3.bf16.msk.msra.mxu0 (!%p292_p9), %vm1268_vm3, %v1267_v7  ;;  %1158 = vmatprep.mubr.msk.f32.mxu0 (!%p292_p9), %vm1475_vm4, %v1476_v14  ;;  %v555_v36 = vld [vmem:[%s1874_s3 + $0x8] sm:$0xff] (!%p292_p9)  ;;  %v556_v37 = vld [vmem:[%s1874_s3 + $0x10] sm:$0xff] (!%p292_p9)  ;;  %v557_v39 = vld [vmem:[%s1874_s3 + $0x18] sm:$0xff] (!%p292_p9)  ;;  %vm500_vm8 = vcmask (!%p292_p9), 261120   ;;  %s1479_s24 = smov (!%p292_p9), 32   ;;  %vm525_vm9 = vcmask (!%p292_p9), 523520  }
  0x11   : > { %1191 = vmatprep.mubr.msk.f32.mxu1 (!%p292_p9), %vm1475_vm4, %v1476_v14  ;;  %1288 = vmatprep.subr.bf16.mxu0 (!%p292_p9), %v1473_v6  ;;  %v1271_v38 = vpack.c.bf16 (!%p292_p9), %v555_v36, %v554_v35  ;;  %v1274_v40 = vpack.c.bf16 (!%p292_p9), %v557_v39, %v556_v37  ;;  %v558_v41 = vld [vmem:[%s1874_s3 + $0x20] sm:$0xff] (!%p292_p9)  ;;  %v559_v42 = vld [vmem:[%s1874_s3 + $0x28] sm:$0xff] (!%p292_p9)  ;;  %v560_v51 = vld [vmem:[%s1874_s3 + $0x30] sm:$0xff] (!%p292_p9)  ;;  %vm547_vm10 = vcmask (!%p292_p9), 785920   ;;  %vm573_vm11 = vcmask (!%p292_p9), 785408   ;;  %s1103_s28 = smul.u32 (!%p292_p9), 384, %s1554_s13 }
  0x12   : > { %v1277_v43 = vpack.c.bf16 (!%p292_p9), %v559_v42, %v558_v41  ;;  %v1074_v44 = vld [vmem:[%s1873_s2] ss:$0 sm:$0xff] (!%p292_p9)  ;;  %v561_v52 = vld [vmem:[%s1874_s3 + $0x38] sm:$0xff] (!%p292_p9)  ;;  %v563_v58 = vld [vmem:[%s1874_s3 + $0x48] sm:$0xff] (!%p292_p9)  ;;  %s1481_s13 = smov (!%p292_p9), [#allocation3]  }
  0x13   : > { %1272 = vmatpush3.bf16.msra.mxu1 (!%p292_p9), %v1271_v38  ;;  %v1280_v53 = vpack.c.bf16 (!%p292_p9), %v561_v52, %v560_v51  ;;  %v562_v57 = vld [vmem:[%s1874_s3 + $0x40] sm:$0xff] (!%p292_p9)  ;;  %v564_v61 = vld [vmem:[%s1874_s3 + $0x50] sm:$0xff] (!%p292_p9)  ;;  %v565_v62 = vld [vmem:[%s1874_s3 + $0x58] sm:$0xff] (!%p292_p9)  ;;  %s1827_s17 = scalar_lea.hbm (!%p292_p9), %s1880_s9, %s1103_s28 }
  0x14   : > { %1273 = vmatprep.subr.bf16.mxu1 (!%p292_p9), %v1473_v6  ;;  %v1283_v59 = vpack.c.bf16 (!%p292_p9), %v563_v58, %v562_v57  ;;  %v722_v35 = vld [vmem:[%s1876_s5 + $0x28] sm:$0xff] (!%p292_p9)  ;;  %v1082_v37 = vld [vmem:[%s1875_s4] ss:$0 sm:$0xff] (!%p292_p9) }
  0x15   : > { %s1888_s21 = smov (!%p328_p10, %s327_s21), 5  ;;  %v726_v51 = vld [vmem:[%s1876_s5 + $0x48] sm:$0xff] }
  0x16   : > { %s1070_s22 = sshll.u32 %s1888_s21, 3 }
  0x17   : > { %s331_s25 = scalar_lea.vmem %s1871_s0, %s1070_s22  ;;  %1275 = vmatpush3.bf16.msra.mxu1 %v1274_v40  ;;  %s1413_s22 = sshll.u32 %s1481_s13, 4  ;;  %s1414_s22 = int_to_ptr.vmem [resolvable:$false] %s1413_s22 }
  0x18   : > { %v334_v0 = vld [vmem:[%s331_s25] sm:$0xff]  ;;  %v335_v1 = vld [vmem:[%s331_s25 + $0x8] sm:$0xff]  ;;  %v336_v2 = vld [vmem:[%s331_s25 + $0x10] sm:$0xff]  ;;  %1276 = vmatprep.subr.bf16.mxu1 %v1473_v6  ;;  %s1480_s25 = smov 64   ;;  %s1415_s23 = scalar_lea.vmem %s1414_s22, 768 }
  0x19   : > { %1385 = vtanh.f32 %v334_v0  ;;  %v1286_v0 = vpack.c.bf16 %v565_v62, %v564_v61 }
  0x1a   : > { %1387 = vtanh.f32 %v335_v1 }
  0x1b   : > { %1389 = vtanh.f32 %v336_v2  ;;  %1278 = vmatpush3.bf16.msra.mxu1 %v1277_v43 }
  0x1c   : > { %1279 = vmatprep.subr.bf16.mxu1 %v1473_v6 }
  0x1f   : > { %1281 = vmatpush3.bf16.msra.mxu1 %v1280_v53 }
  0x20   : > { %1282 = vmatprep.subr.bf16.mxu1 %v1473_v6 }
  0x23   : > { %v1386_v5 = vpop.eup %1385  ;;  %1284 = vmatpush3.bf16.msra.mxu1 %v1283_v59 }
  0x24   : > { %v1388_v8 = vpop.eup %1387  ;;  %v344_v9 = vadd.f32 %v1386_v5, %v1386_v5  ;;  %341 = vst.msk [vmem:[#allocation2] sm:$0xff] %vm340_vm0, %v1386_v5  ;;  %1285 = vmatprep.subr.bf16.mxu1 %v1473_v6 }
  0x25   : > { %v1390_v10 = vpop.eup %1389  ;;  %v345_v11 = vadd.f32 %v1388_v8, %v1388_v8  ;;  %342 = vst.msk [vmem:[#allocation2 + $0x8] sm:$0xff] %vm340_vm0, %v1388_v8 }
  0x26   : > { %v347_v12 = vmul.f32 %v1386_v5, %v344_v9  ;;  %v346_v13 = vadd.f32 %v1390_v10, %v1390_v10  ;;  %343 = vst.msk [vmem:[#allocation2 + $0x10] sm:$0xff] %vm340_vm0, %v1390_v10 }
  0x27   : > { %v348_v15 = vmul.f32 %v1388_v8, %v345_v11  ;;  %1287 = vmatpush3.bf16.msra.mxu1 %v1286_v0 }
  0x28   : > { %v1071_v16 = vadd.f32 -1.0, %v347_v12  ;;  %v349_v17 = vmul.f32 %v1390_v10, %v346_v13  ;;  %1324 = vmatprep.subr.bf16.mxu1 %v1473_v6 }
  0x29   : > { %v1072_v18 = vadd.f32 -1.0, %v348_v15 }
  0x2a   : > { %356 = vrot.lane.b32.xlu0 %v1071_v16, %s1477_s14  ;;  %v369_v19 = vmul.f32 %v1071_v16, %v344_v9  ;;  %v1073_v20 = vadd.f32 -1.0, %v349_v17 }
  0x2b   : > { %358 = vrot.lane.b32.xlu1 %v1072_v18, %s1477_s14  ;;  %v370_v21 = vmul.f32 %v1072_v18, %v345_v11 }
  0x2c   : > { %v372_v22 = vsub.f32 %v369_v19, %v1386_v5  ;;  %v371_v23 = vmul.f32 %v1073_v20, %v346_v13 }
  0x2d   : > { %v373_v24 = vsub.f32 %v370_v21, %v1388_v8 }
  0x2e   : > { %378 = vrot.lane.b32.xlu0 %v372_v22, %s1478_s16  ;;  %v374_v25 = vsub.f32 %v371_v23, %v1390_v10 }
  0x2f   : > { %380 = vrot.lane.b32.xlu1 %v373_v24, %s1478_s16 }
  0x32   : > { %360 = vrot.lane.b32.xlu0 %v1073_v20, %s1477_s14 }
  0x33   : > { %382 = vrot.lane.b32.xlu1 %v374_v25, %s1478_s16 }
  0x9c   : > { %v357_v26 = vpop.permute.xlu0 %356 }
  0x9d   : > { %366 = vst.msk [vmem:[#allocation2] sm:$0xff] %vm365_vm5, %v357_v26  ;;  %v359_v27 = vpop.permute.xlu1 %358 }
  0x9e   : > { %367 = vst.msk [vmem:[#allocation2 + $0x8] sm:$0xff] %vm365_vm5, %v359_v27 }
  0xa0   : > { %v379_v28 = vpop.permute.xlu0 %378 }
  0xa1   : > { %388 = vst.msk [vmem:[#allocation2] sm:$0xff] %vm387_vm6, %v379_v28  ;;  %v381_v29 = vpop.permute.xlu1 %380  ;;  %v717_v28 = vld [vmem:[%s1876_s5] sm:$0xff] }
  0xa2   : > { %389 = vst.msk [vmem:[#allocation2 + $0x8] sm:$0xff] %vm387_vm6, %v381_v29  ;;  %v718_v29 = vld [vmem:[%s1876_s5 + $0x8] sm:$0xff] }
  0xa4   : > { %v361_v30 = vpop.permute.xlu0 %360 }
  0xa5   : > { %368 = vst.msk [vmem:[#allocation2 + $0x10] sm:$0xff] %vm365_vm5, %v361_v30  ;;  %v383_v31 = vpop.permute.xlu1 %382  ;;  %v719_v30 = vld [vmem:[%s1876_s5 + $0x10] sm:$0xff] }
  0xa6   : > { %390 = vst.msk [vmem:[#allocation2 + $0x10] sm:$0xff] %vm387_vm6, %v383_v31  ;;  %v1289_v31 = vpack.c.bf16 %v718_v29, %v717_v28  ;;  %v884_v28 = vld [vmem:[%s1878_s7 + $0x28] sm:$0xff] }
  0xa8   : > { %v391_v32 = vld [vmem:[#allocation2] sm:$0xff] }
  0xa9   : > { %1159 = vmatmul.mubr.msk.f32.vlgmr.msra.gmra.mrb[0].mxu0 %vm403_vm7, %v391_v32  ;;  %v392_v33 = vld [vmem:[#allocation2 + $0x8] sm:$0xff] }
  0xaa   : > { %1161 = vmatprep.mubr.msk.f32.mxu0 %vm1475_vm4, %v1476_v14  ;;  %v720_v32 = vld [vmem:[%s1876_s5 + $0x18] sm:$0xff]  ;;  %1290 = vmatpush3.bf16.msra.mxu0 %v1289_v31 }
  0xab   : > { %1291 = vmatprep.subr.bf16.mxu0 %v1473_v6 }
  0xad   : > { %1162 = vmatmul.mubr.msk.f32.gmra.mrb[2].mxu0 %vm403_vm7, %v392_v33  ;;  %v393_v34 = vld [vmem:[#allocation2 + $0x10] sm:$0xff]  ;;  %v1292_v33 = vpack.c.bf16 %v720_v32, %v719_v30 }
  0xae   : > { %1164 = vmatprep.mubr.msk.f32.mxu0 %vm1475_vm4, %v1476_v14  ;;  %v1089_v30 = vld [vmem:[%s1877_s6] ss:$0 sm:$0xff] }
  0xaf   : > { %1293 = vmatpush3.bf16.msra.mxu0 %v1292_v33 }
  0xb0   : > { %1294 = vmatprep.subr.bf16.mxu0 %v1473_v6 }
  0xb1   : > { %1165 = vmatmul.mubr.msk.f32.gmra.mrb[4].mxu0 %vm403_vm7, %v393_v34  ;;  %v721_v34 = vld [vmem:[%s1876_s5 + $0x20] sm:$0xff] }
  0xb2   : > { %1224 = vmatprep.mubr.msk.f32.mxu0 %vm1475_vm4, %v1476_v14  ;;  %v1295_v36 = vpack.c.bf16 %v722_v35, %v721_v34 }
  0xb4   : > { %1296 = vmatpush3.bf16.msra.mxu0 %v1295_v36 }
  0xb5   : > { %1297 = vmatprep.subr.bf16.mxu0 %v1473_v6 }
 0x17c   : > { %v483_v45 = vpop.f32.mrb[0].mxu0 }
 0x17d   : > { %v484_v46 = vadd.f32 %v1074_v44, %v483_v45  ;;  %v1160_v47 = vpop.f32.mrb[1].mxu0  ;;  %v724_v45 = vld [vmem:[%s1876_s5 + $0x38] sm:$0xff] }
 0x17f   : > { %1391 = vtanh.f32 %v484_v46 }
 0x180   : > { %v488_v48 = vpop.f32.mrb[2].mxu0 }
 0x181   : > { %v489_v49 = vadd.f32 %v1074_v44, %v488_v48  ;;  %v1163_v50 = vpop.f32.mrb[3].mxu0 }
 0x182   : > { %v725_v50 = vld [vmem:[%s1876_s5 + $0x40] sm:$0xff] }
 0x183   : > { %1393 = vtanh.f32 %v489_v49  ;;  %v1301_v52 = vpack.c.bf16 %v726_v51, %v725_v50  ;;  %v890_v50 = vld [vmem:[%s1878_s7 + $0x58] sm:$0xff] }
 0x184   : > { %v493_v54 = vpop.f32.mrb[4].mxu0 }
 0x185   : > { %v494_v55 = vadd.f32 %v1074_v44, %v493_v54  ;;  %v1166_v56 = vpop.f32.mrb[5].mxu0  ;;  %v723_v44 = vld [vmem:[%s1876_s5 + $0x30] sm:$0xff] }
 0x186   : > { %v1298_v46 = vpack.c.bf16 %v724_v45, %v723_v44  ;;  %v727_v54 = vld [vmem:[%s1876_s5 + $0x50] sm:$0xff]  ;;  %v887_v44 = vld [vmem:[%s1878_s7 + $0x40] sm:$0xff]  ;;  %v888_v45 = vld [vmem:[%s1878_s7 + $0x48] sm:$0xff] }
 0x187   : > { %1395 = vtanh.f32 %v494_v55  ;;  %v728_v55 = vld [vmem:[%s1876_s5 + $0x58] sm:$0xff] }
 0x188   : > { %1299 = vmatpush3.bf16.msra.mxu0 %v1298_v46  ;;  %v1304_v57 = vpack.c.bf16 %v728_v55, %v727_v54 }
 0x189   : > { %v1392_v60 = vpop.eup %1391  ;;  %1300 = vmatprep.subr.bf16.mxu0 %v1473_v6 }
 0x18a   : > { %v504_v63 = vadd.f32 %v1392_v60, %v1392_v60  ;;  %501 = vst.msk [vmem:[#allocation2] sm:$0xff] %vm500_vm8, %v1392_v60 }
 0x18c   : > { %v507_v1 = vmul.f32 %v1392_v60, %v504_v63  ;;  %1302 = vmatpush3.bf16.msra.mxu0 %v1301_v52 }
 0x18d   : > { %v1394_v2 = vpop.eup %1393  ;;  %1303 = vmatprep.subr.bf16.mxu0 %v1473_v6 }
 0x18e   : > { %v1079_v3 = vadd.f32 -1.0, %v507_v1  ;;  %v505_v4 = vadd.f32 %v1394_v2, %v1394_v2  ;;  %502 = vst.msk [vmem:[#allocation2 + $0x8] sm:$0xff] %vm500_vm8, %v1394_v2 }
 0x190   : > { %516 = vrot.lane.b32.xlu0 %v1079_v3, %s1479_s24  ;;  %v529_v5 = vmul.f32 %v1079_v3, %v504_v63  ;;  %v508_v7 = vmul.f32 %v1394_v2, %v505_v4  ;;  %1305 = vmatpush3.bf16.msra.mxu0 %v1304_v57 }
 0x191   : > { %v1396_v8 = vpop.eup %1395  ;;  %1306 = vmatprep.subr.bf16.mxu0 %v1473_v6 }
 0x192   : > { %v532_v9 = vsub.f32 %v529_v5, %v1392_v60  ;;  %v1080_v10 = vadd.f32 -1.0, %v508_v7  ;;  %v506_v11 = vadd.f32 %v1396_v8, %v1396_v8  ;;  %503 = vst.msk [vmem:[#allocation2 + $0x10] sm:$0xff] %vm500_vm8, %v1396_v8 }
 0x194   : > { %538 = vrot.lane.b32.xlu1 %v532_v9, %s1480_s25  ;;  %518 = vrot.lane.b32.xlu0 %v1080_v10, %s1479_s24  ;;  %v530_v12 = vmul.f32 %v1080_v10, %v505_v4  ;;  %v509_v13 = vmul.f32 %v1396_v8, %v506_v11 }
 0x196   : > { %v533_v15 = vsub.f32 %v530_v12, %v1394_v2  ;;  %v1081_v16 = vadd.f32 -1.0, %v509_v13 }
 0x198   : > { %540 = vrot.lane.b32.xlu1 %v533_v15, %s1480_s25  ;;  %520 = vrot.lane.b32.xlu0 %v1081_v16, %s1479_s24  ;;  %v531_v17 = vmul.f32 %v1081_v16, %v506_v11 }
 0x19a   : > { %v534_v18 = vsub.f32 %v531_v17, %v1396_v8 }
 0x19c   : > { %542 = vrot.lane.b32.xlu1 %v534_v18, %s1480_s25 }
 0x202   : > { %v517_v19 = vpop.permute.xlu0 %516 }
 0x203   : > { %526 = vst.msk [vmem:[#allocation2] sm:$0xff] %vm525_vm9, %v517_v19 }
 0x206   : > { %v539_v20 = vpop.permute.xlu1 %538  ;;  %v519_v21 = vpop.permute.xlu0 %518 }
 0x207   : > { %548 = vst.msk [vmem:[#allocation2] sm:$0xff] %vm547_vm10, %v539_v20 }
 0x208   : > { %527 = vst.msk [vmem:[#allocation2 + $0x8] sm:$0xff] %vm525_vm9, %v519_v21  ;;  %v879_v21 = vld [vmem:[%s1878_s7] sm:$0xff] }
 0x20a   : > { %v541_v22 = vpop.permute.xlu1 %540  ;;  %v521_v23 = vpop.permute.xlu0 %520 }
 0x20b   : > { %549 = vst.msk [vmem:[#allocation2 + $0x8] sm:$0xff] %vm547_vm10, %v541_v22  ;;  %v880_v22 = vld [vmem:[%s1878_s7 + $0x8] sm:$0xff] }
 0x20c   : > { %528 = vst.msk [vmem:[#allocation2 + $0x10] sm:$0xff] %vm525_vm9, %v521_v23  ;;  %v881_v23 = vld [vmem:[%s1878_s7 + $0x10] sm:$0xff] }
 0x20e   : > { %v543_v24 = vpop.permute.xlu1 %542  ;;  %v551_v25 = vld [vmem:[#allocation2] sm:$0xff] }
 0x20f   : > { %550 = vst.msk [vmem:[#allocation2 + $0x10] sm:$0xff] %vm547_vm10, %v543_v24  ;;  %1192 = vmatmul.mubr.msk.f32.vlgmr.msra.gmra.mrb[0].mxu1 %vm573_vm11, %v551_v25  ;;  %v1307_v24 = vpack.c.bf16 %v880_v22, %v879_v21  ;;  %v882_v25 = vld [vmem:[%s1878_s7 + $0x18] sm:$0xff] }
 0x210   : > { %1194 = vmatprep.mubr.msk.f32.mxu1 %vm1475_vm4, %v1476_v14 }
 0x211   : > { %1330 = vmatpush3.bf16.msra.mxu1 %v1307_v24 }
 0x212   : > { %v552_v26 = vld [vmem:[#allocation2 + $0x8] sm:$0xff]  ;;  %1325 = vmatprep.subr.bf16.mxu1 %v1473_v6 }
 0x213   : > { %1195 = vmatmul.mubr.msk.f32.gmra.mrb[2].mxu1 %vm573_vm11, %v552_v26  ;;  %v1310_v26 = vpack.c.bf16 %v882_v25, %v881_v23 }
 0x214   : > { %1197 = vmatprep.mubr.msk.f32.mxu1 %vm1475_vm4, %v1476_v14 }
 0x215   : > { %1331 = vmatpush3.bf16.msra.mxu1 %v1310_v26 }
 0x216   : > { %v553_v27 = vld [vmem:[#allocation2 + $0x10] sm:$0xff]  ;;  %1326 = vmatprep.subr.bf16.mxu1 %v1473_v6 }
 0x217   : > { %1198 = vmatmul.mubr.msk.f32.gmra.mrb[4].mxu1 %vm573_vm11, %v553_v27  ;;  %v883_v27 = vld [vmem:[%s1878_s7 + $0x20] sm:$0xff] }
 0x218   : > { %1260 = vmatprep.mubr.msk.f32.mxu1 %vm1475_vm4, %v1476_v14  ;;  %v1313_v29 = vpack.c.bf16 %v884_v28, %v883_v27 }
 0x21a   : > { %1332 = vmatpush3.bf16.msra.mxu1 %v1313_v29 }
 0x21b   : > { %1327 = vmatprep.subr.bf16.mxu1 %v1473_v6 }
 0x2e2   : > { %v649_v38 = vpop.f32.mrb[0].mxu1 }
 0x2e3   : > { %v650_v39 = vadd.f32 %v1082_v37, %v649_v38  ;;  %v1193_v40 = vpop.f32.mrb[1].mxu1 }
 0x2e4   : > { %v885_v40 = vld [vmem:[%s1878_s7 + $0x30] sm:$0xff] }
 0x2e5   : > { %1397 = vtanh.f32 %v650_v39 }
 0x2e6   : > { %v654_v41 = vpop.f32.mrb[2].mxu1 }
 0x2e7   : > { %v655_v42 = vadd.f32 %v1082_v37, %v654_v41  ;;  %v1196_v43 = vpop.f32.mrb[3].mxu1  ;;  %v886_v41 = vld [vmem:[%s1878_s7 + $0x38] sm:$0xff] }
 0x2e9   : > { %1399 = vtanh.f32 %v655_v42  ;;  %v1316_v42 = vpack.c.bf16 %v886_v41, %v885_v40 }
 0x2ea   : > { %v659_v47 = vpop.f32.mrb[4].mxu1 }
 0x2eb   : > { %v660_v48 = vadd.f32 %v1082_v37, %v659_v47  ;;  %v1199_v49 = vpop.f32.mrb[5].mxu1  ;;  %1333 = vmatpush3.bf16.msra.mxu1 %v1316_v42  ;;  %v1319_v47 = vpack.c.bf16 %v888_v45, %v887_v44 }
 0x2ec   : > { %1328 = vmatprep.subr.bf16.mxu1 %v1473_v6  ;;  %v889_v49 = vld [vmem:[%s1878_s7 + $0x50] sm:$0xff] }
 0x2ed   : > { %1401 = vtanh.f32 %v660_v48 }
 0x2ef   : > { %v1398_v53 = vpop.eup %1397  ;;  %1334 = vmatpush3.bf16.msra.mxu1 %v1319_v47 }
 0x2f0   : > { %666 = vst.msk [vmem:[#allocation2] sm:$0xff] %vm500_vm8, %v1398_v53  ;;  %v669_v56 = vadd.f32 %v1398_v53, %v1398_v53  ;;  %1329 = vmatprep.subr.bf16.mxu1 %v1473_v6 }
 0x2f2   : > { %v672_v58 = vmul.f32 %v1398_v53, %v669_v56 }
 0x2f3   : > { %v1400_v59 = vpop.eup %1399 }
 0x2f4   : > { %667 = vst.msk [vmem:[#allocation2 + $0x8] sm:$0xff] %vm500_vm8, %v1400_v59  ;;  %v1086_v60 = vadd.f32 -1.0, %v672_v58  ;;  %v670_v61 = vadd.f32 %v1400_v59, %v1400_v59 }
 0x2f6   : > { %681 = vrot.lane.b32.xlu0 %v1086_v60, %s1479_s24  ;;  %v673_v62 = vmul.f32 %v1400_v59, %v670_v61  ;;  %v693_v63 = vmul.f32 %v1086_v60, %v669_v56 }
 0x2f7   : > { %v1402_v0 = vpop.eup %1401 }
 0x2f8   : > { %668 = vst.msk [vmem:[#allocation2 + $0x10] sm:$0xff] %vm500_vm8, %v1402_v0  ;;  %v1087_v1 = vadd.f32 -1.0, %v673_v62  ;;  %v696_v2 = vsub.f32 %v693_v63, %v1398_v53  ;;  %v671_v3 = vadd.f32 %v1402_v0, %v1402_v0  ;;  %v1322_v53 = vpack.c.bf16 %v890_v50, %v889_v49 }
 0x2fa   : > { %683 = vrot.lane.b32.xlu0 %v1087_v1, %s1479_s24  ;;  %702 = vrot.lane.b32.xlu1 %v696_v2, %s1480_s25  ;;  %v694_v4 = vmul.f32 %v1087_v1, %v670_v61  ;;  %v674_v5 = vmul.f32 %v1402_v0, %v671_v3 }
 0x2fb   : > { %1335 = vmatpush3.bf16.msra.mxu1 %v1322_v53 }
 0x2fc   : > { %v697_v7 = vsub.f32 %v694_v4, %v1400_v59  ;;  %v1088_v8 = vadd.f32 -1.0, %v674_v5 }
 0x2fe   : > { %704 = vrot.lane.b32.xlu1 %v697_v7, %s1480_s25  ;;  %685 = vrot.lane.b32.xlu0 %v1088_v8, %s1479_s24  ;;  %v695_v9 = vmul.f32 %v1088_v8, %v671_v3 }
 0x300   : > { %v698_v10 = vsub.f32 %v695_v9, %v1402_v0 }
 0x302   : > { %706 = vrot.lane.b32.xlu1 %v698_v10, %s1480_s25 }
 0x368   : > { %v682_v11 = vpop.permute.xlu0 %681 }
 0x369   : > { %690 = vst.msk [vmem:[#allocation2] sm:$0xff] %vm525_vm9, %v682_v11 }
 0x36c   : > { %v684_v12 = vpop.permute.xlu0 %683  ;;  %v703_v13 = vpop.permute.xlu1 %702 }
 0x36d   : > { %691 = vst.msk [vmem:[#allocation2 + $0x8] sm:$0xff] %vm525_vm9, %v684_v12  ;;  %v1096_v12 = vld [vmem:[%s1879_s8] ss:$0 sm:$0xff] }
 0x36e   : > { %711 = vst.msk [vmem:[#allocation2] sm:$0xff] %vm547_vm10, %v703_v13 }
 0x370   : > { %v705_v15 = vpop.permute.xlu1 %704  ;;  %v686_v16 = vpop.permute.xlu0 %685 }
 0x371   : > { %712 = vst.msk [vmem:[#allocation2 + $0x8] sm:$0xff] %vm547_vm10, %v705_v15 }
 0x372   : > { %692 = vst.msk [vmem:[#allocation2 + $0x10] sm:$0xff] %vm525_vm9, %v686_v16 }
 0x374   : > { %v707_v17 = vpop.permute.xlu1 %706 }
 0x375   : > { %v714_v18 = vld [vmem:[#allocation2] sm:$0xff]  ;;  %713 = vst.msk [vmem:[#allocation2 + $0x10] sm:$0xff] %vm547_vm10, %v707_v17 }
 0x376   : > { %1225 = vmatmul.mubr.msk.f32.vlgmr.msra.gmra.mrb[6].mxu0 %vm573_vm11, %v714_v18 }
 0x377   : > { %1227 = vmatprep.mubr.msk.f32.mxu0 %vm1475_vm4, %v1476_v14  ;;  %1308 = vmatpush3.bf16.msra.mxu0 %v1307_v24 }
 0x378   : > { %v715_v19 = vld [vmem:[#allocation2 + $0x8] sm:$0xff]  ;;  %1309 = vmatprep.subr.bf16.mxu0 %v1473_v6 }
 0x37a   : > { %1228 = vmatmul.mubr.msk.f32.gmra.mrb[8].mxu0 %vm573_vm11, %v715_v19 }
 0x37b   : > { %1230 = vmatprep.mubr.msk.f32.mxu0 %vm1475_vm4, %v1476_v14  ;;  %1311 = vmatpush3.bf16.msra.mxu0 %v1310_v26 }
 0x37c   : > { %v716_v20 = vld [vmem:[#allocation2 + $0x10] sm:$0xff]  ;;  %1312 = vmatprep.subr.bf16.mxu0 %v1473_v6 }
 0x37e   : > { %1231 = vmatmul.mubr.msk.f32.gmra.mrb[10].mxu0 %vm573_vm11, %v716_v20 }
 0x37f   : > { %1257 = vmatprep.mubr.msk.f32.mxu0 %vm1475_vm4, %v1476_v14  ;;  %1314 = vmatpush3.bf16.msra.mxu0 %v1313_v29 }
 0x380   : > { %1315 = vmatprep.subr.bf16.mxu0 %v1473_v6 }
 0x383   : > { %1317 = vmatpush3.bf16.msra.mxu0 %v1316_v42 }
 0x384   : > { %1318 = vmatprep.subr.bf16.mxu0 %v1473_v6 }
 0x387   : > { %1320 = vmatpush3.bf16.msra.mxu0 %v1319_v47 }
 0x388   : > { %1321 = vmatprep.subr.bf16.mxu0 %v1473_v6 }
 0x38b   : > { %1323 = vmatpush3.bf16.msra.mxu0 %v1322_v53 }
 0x449   : > { %v811_v31 = vpop.f32.mrb[6].mxu0 }
 0x44a   : > { %v812_v32 = vadd.f32 %v1089_v30, %v811_v31  ;;  %v1226_v33 = vpop.f32.mrb[7].mxu0 }
 0x44c   : > { %1403 = vtanh.f32 %v812_v32 }
 0x44d   : > { %v816_v34 = vpop.f32.mrb[8].mxu0 }
 0x44e   : > { %v817_v35 = vadd.f32 %v1089_v30, %v816_v34  ;;  %v1229_v36 = vpop.f32.mrb[9].mxu0 }
 0x450   : > { %1405 = vtanh.f32 %v817_v35 }
 0x451   : > { %v821_v37 = vpop.f32.mrb[10].mxu0 }
 0x452   : > { %v822_v38 = vadd.f32 %v1089_v30, %v821_v37  ;;  %v1232_v39 = vpop.f32.mrb[11].mxu0 }
 0x454   : > { %1407 = vtanh.f32 %v822_v38 }
 0x456   : > { %v1404_v43 = vpop.eup %1403 }
 0x457   : > { %828 = vst.msk [vmem:[#allocation2] sm:$0xff] %vm500_vm8, %v1404_v43  ;;  %v831_v46 = vadd.f32 %v1404_v43, %v1404_v43 }
 0x459   : > { %v834_v52 = vmul.f32 %v1404_v43, %v831_v46 }
 0x45a   : > { %v1406_v48 = vpop.eup %1405 }
 0x45b   : > { %829 = vst.msk [vmem:[#allocation2 + $0x8] sm:$0xff] %vm500_vm8, %v1406_v48  ;;  %v832_v51 = vadd.f32 %v1406_v48, %v1406_v48  ;;  %v1093_v57 = vadd.f32 -1.0, %v834_v52 }
 0x45d   : > { %v835_v54 = vmul.f32 %v1406_v48, %v832_v51  ;;  %v855_v6 = vmul.f32 %v1093_v57, %v831_v46 }
 0x45e   : > { %v1408_v55 = vpop.eup %1407 }
 0x45f   : > { %830 = vst.msk [vmem:[#allocation2 + $0x10] sm:$0xff] %vm500_vm8, %v1408_v55  ;;  %v1094_v56 = vadd.f32 -1.0, %v835_v54  ;;  %v833_v58 = vadd.f32 %v1408_v55, %v1408_v55  ;;  %v858_v63 = vsub.f32 %v855_v6, %v1404_v43 }
 0x461   : > { %845 = vrot.lane.b32.xlu0 %v1094_v56, %s1479_s24  ;;  %v856_v59 = vmul.f32 %v1094_v56, %v832_v51  ;;  %v836_v60 = vmul.f32 %v1408_v55, %v833_v58 }
 0x463   : > { %v859_v61 = vsub.f32 %v856_v59, %v1406_v48  ;;  %v1095_v62 = vadd.f32 -1.0, %v836_v60 }
 0x465   : > { %843 = vrot.lane.b32.xlu0 %v1093_v57, %s1479_s24  ;;  %866 = vrot.lane.b32.xlu1 %v859_v61, %s1480_s25  ;;  %v857_v0 = vmul.f32 %v1095_v62, %v833_v58 }
 0x467   : > { %v860_v1 = vsub.f32 %v857_v0, %v1408_v55 }
 0x469   : > { %864 = vrot.lane.b32.xlu0 %v858_v63, %s1480_s25  ;;  %847 = vrot.lane.b32.xlu1 %v1095_v62, %s1479_s24  ;;  %s324_s24 = sand.u32 1, %s1463_s10  }
 0x46a   : > { %s1829_s21 = scalar_lea.sflag [#allocation4], %s324_s24 }
 0x46d   : > { %868 = vrot.lane.b32.xlu1 %v860_v1, %s1480_s25  ;;  %s1336_s25 = smul.u32 24, %s324_s24 }
 0x46f   : > { %s326_s26 = scalar_lea.vmem [#allocation3], %s1336_s25 }
 0x470   : > { %s1004_s27 = sshll.u32 %s326_s26, 4  ;;  %s1822_s27 = int_to_ptr.vmem [resolvable:$true] %s1004_s27 }
 0x471   : > { %s1409_s25 = scalar_lea.vmem %s1822_s27, 384  ;;  %p1416_p0 = scmp.lt.s32.totalorder %s1822_s27, %s1414_s22 }
 0x472   : > { %p1410_p11 = scmp.ne.s32.totalorder %s1822_s27, %s1409_s25  ;;  %p1417_p1 = scmp.lt.s32.totalorder %s1415_s23, %s1409_s25 }
 0x474   : > { %p1411_p12 = pnand %p1410_p11, %p1571_p5  ;;  %p1418_p2 = por %p1417_p1, %p1416_p0 }
 0x476   : > { %p1412_p13 = pneg %p1411_p12 }
 0x478   : > { %p1419_p3 = pnand %p1418_p2, %p1412_p13 }
 0x4d3   : > { %v846_v2 = vpop.permute.xlu0 %845 }
 0x4d4   : > { %853 = vst.msk [vmem:[#allocation2 + $0x8] sm:$0xff] %vm525_vm9, %v846_v2 }
 0x4d7   : > { %v844_v3 = vpop.permute.xlu0 %843  ;;  %v867_v4 = vpop.permute.xlu1 %866 }
 0x4d8   : > { %852 = vst.msk [vmem:[#allocation2] sm:$0xff] %vm525_vm9, %v844_v3 }
 0x4d9   : > { %874 = vst.msk [vmem:[#allocation2 + $0x8] sm:$0xff] %vm547_vm10, %v867_v4 }
 0x4db   : > { %v865_v5 = vpop.permute.xlu0 %864  ;;  %v848_v7 = vpop.permute.xlu1 %847 }
 0x4dc   : > { %873 = vst.msk [vmem:[#allocation2] sm:$0xff] %vm547_vm10, %v865_v5 }
 0x4dd   : > { %854 = vst.msk [vmem:[#allocation2 + $0x10] sm:$0xff] %vm525_vm9, %v848_v7 }
 0x4df   : > { %v869_v8 = vpop.permute.xlu1 %868 }
 0x4e0   : > { %v877_v9 = vld [vmem:[#allocation2 + $0x8] sm:$0xff]  ;;  %875 = vst.msk [vmem:[#allocation2 + $0x10] sm:$0xff] %vm547_vm10, %v869_v8 }
 0x4e1   : > { %1261 = vmatmul.mubr.msk.f32.vlgmr.msra.gmra.mrb[6].mxu1 %vm573_vm11, %v877_v9 }
 0x4e2   : > { %1263 = vmatprep.mubr.msk.f32.mxu1 %vm1475_vm4, %v1476_v14 }
 0x4e3   : > { %v876_v10 = vld [vmem:[#allocation2] sm:$0xff] }
 0x4e4   : > { %1258 = vmatmul.mubr.msk.f32.vlgmr.msra.gmra.mrb[12].mxu0 %vm573_vm11, %v876_v10 }
 0x4e7   : > { %v878_v11 = vld [vmem:[#allocation2 + $0x10] sm:$0xff] }
 0x4e8   : > { %1264 = vmatmul.mubr.msk.f32.gmra.mrb[8].mxu1 %vm573_vm11, %v878_v11 }
 0x5b4   : > { %v978_v13 = vpop.f32.mrb[6].mxu1 }
 0x5b5   : > { %v979_v15 = vadd.f32 %v1096_v12, %v978_v13  ;;  %v1262_v16 = vpop.f32.mrb[7].mxu1 }
 0x5b7   : > { %988 = vst [vmem:[%s326_s26 + $0x8] sm:$0xff] %v979_v15  ;;  %v973_v14 = vpop.f32.mrb[12].mxu0 }
 0x5b8   : > { %v974_v17 = vadd.f32 %v1096_v12, %v973_v14  ;;  %v1259_v18 = vpop.f32.mrb[13].mxu0 }
 0x5ba   : > { %987 = vst [vmem:[%s326_s26] sm:$0xff] %v974_v17 }
 0x5bb   : > { %v983_v19 = vpop.f32.mrb[8].mxu1 }
 0x5bc   : > { %v984_v20 = vadd.f32 %v1096_v12, %v983_v19  ;;  %v1265_v21 = vpop.f32.mrb[9].mxu1 }
 0x5be   : > { %989 = vst [vmem:[%s326_s26 + $0x10] sm:$0xff] %v984_v20 }
 0x5bf   : > { %1422 = shalt.err (!%p1419_p3)
}
 0x5c0   : > { %s1423_s24 = scalar_lea.hbm %s1827_s17, 384  ;;  %s1427_s29 = scalar_lea.hbm %s1880_s9, 768 }
 0x5c1   : > { %p1424_p4 = scmp.ne.s32.totalorder %s1827_s17, %s1423_s24  ;;  %p1428_p9 = scmp.lt.u32.totalorder %s1827_s17, %s1880_s9 }
 0x5c2   : > { %p1429_p10 = scmp.lt.u32.totalorder %s1427_s29, %s1423_s24  ;;  %p1431_p12 = scmp.lt.u32.totalorder %s1423_s24, %s1827_s17 }
 0x5c3   : > { %p1425_p7 = pnand %p1424_p4, %p1571_p5 }
 0x5c4   : > { %p1430_p11 = por %p1429_p10, %p1428_p9 }
 0x5c5   : > { %p1426_p8 = pneg %p1425_p7 }
 0x5c6   : > { %p1432_p13 = por %p1431_p12, %p1430_p11 }
 0x5c8   : > { %p1433_p0 = pnand %p1432_p13, %p1426_p8 }
 0x5ca   : > { %1436 = shalt.err (!%p1433_p0)
}
 0x5cb   : > { %s1482_s25 = smov 128  }
 0x5cc   : > { %1337 = dma.vmem_to_hbm [thread:$0]  (%p1571_p5), %s1822_s27, 384, %s1827_s17, %s1829_s21, %s1482_s25, %s1482_s25, %s1478_s16  }
 0x5cd PF: > { %p1343_p1 = scmp.ge.s32.totalorder %s1471_s12, 2  ;;  %s1019_s22 = sand.u32 1, %s1459_s30  }
 0x5ce   : > { %s1020_s23 = scalar_lea.sflag [#allocation4], %s1019_s22 }
 0x5cf   : > { %p1340_p2 = pnand %p1343_p1, %p1575_p6 }
 0x5d1   : > { %1454 = dma.done.wait (!%p1340_p2), %s1020_s23, 384  }
 0x5d2   : > { %1456 = vsyncadd (!%p1340_p2), %s1020_s23, 4294966912  ;;  %p19_p3 = scmp.ge.s32.totalorder %s1558_s15, 4   ;;  %s1883_s30 = smov %s1463_s10 }
 0x5d3   : > { %s1884_s10 = smov %s1467_s11  ;;  %s1885_s11 = smov %s1569_s18 }
 0x5d4   : > { %s1886_s12 = smov %s1558_s15  ;;  %21 = sbr.rel (!%p19_p3) target bundleno = 3 (0x3), region = 91 }
 0x5db   :  { %1025 = vsyncpa [#allocation4], 1 }
 0x5dc   :  { %1027 = vsyncpa [#allocation4 + $0x1], 1 }

// kernel: tpu_custom_call.1
= control target key start
LH: loop header
LB: loop body
LE: loop exit
PB: predicated region body
PF: predicated region fallthrough
CT: control target
= control target key end

     0   :  { %14 = vsyncpa [#allocation4], 0  ;;  %s1871_s0 = inlined_call_operand.vmem [shape: f32[48,4], index: 0, kind: input, shape index: {}]   ;;  %s1872_s1 = inlined_call_operand.vmem [shape: f32[12,32], index: 1, kind: input, shape index: {}]   ;;  %s1873_s2 = inlined_call_operand.vmem [shape: f32[1,32], index: 2, kind: input, shape index: {}]   ;;  %s1874_s3 = inlined_call_operand.vmem [shape: f32[96,32], index: 3, kind: input, shape index: {}]   ;;  %s1875_s4 = inlined_call_operand.vmem [shape: f32[1,32], index: 4, kind: input, shape index: {}]   ;;  %s1876_s5 = inlined_call_operand.vmem [shape: f32[96,32], index: 5, kind: input, shape index: {}]   ;;  %s1877_s6 = inlined_call_operand.vmem [shape: f32[1,32], index: 6, kind: input, shape index: {}]   ;;  %s1878_s7 = inlined_call_operand.vmem [shape: f32[96,128], index: 7, kind: input, shape index: {}]   ;;  %s1879_s8 = inlined_call_operand.vmem [shape: f32[1,128], index: 8, kind: input, shape index: {}]   ;;  %s1880_s9 = inlined_call_operand.hbm [shape: f32[48,128], index: 9, kind: output, shape index: {}]  }
   0x1   :  { %16 = vsyncpa [#allocation4 + $0x1], 0  ;;  %s1533_s30 = smov 0   ;;  %s1535_s10 = smov 0  }
   0x2   :  { %s1537_s11 = smov 0   ;;  %s1539_s12 = smov 0  }
   0x3 LB: > { %s1554_s13 = sadd.s32 4294967295, %s1471_s12   ;;  %s1066_s14 = sadd.s32 4294967294, %s1471_s12   ;;  %s1471_s12 = sphi %s1539_s12, %s1886_s12   ;;  %s1467_s11 = sphi %s1537_s11, %s1885_s11   ;;  %s1463_s10 = sphi %s1535_s10, %s1884_s10   ;;  %s1459_s30 = sphi %s1533_s30, %s1883_s30  }
   0x4   : > { %s1558_s15 = sadd.s32 1, %s1471_s12   ;;  %s223_s16 = sadd.s32 1, %s1467_s11 }
   0x5   : > { %s220_s17 = ssub.s32 %s1471_s12, %s1558_s15  ;;  %p233_p0 = scmp.ne.s32.totalorder %s1467_s11, %s1463_s10 }
   0x6   : > { %p221_p1 = scmp.eq.s32.totalorder %s220_s17, 0  ;;  %p234_p2 = scmp.eq.s32.totalorder %s1554_s13, 1 }
   0x7   : > { %p239_p3 = scmp.ne.s32.totalorder %s1463_s10, %s1459_s30  ;;  %p240_p4 = scmp.eq.s32.totalorder %s1066_s14, 1 }
   0x8   : > { %s1569_s18 = scalar_select %p221_p1, %s1467_s11, %s223_s16  }
   0x9   : > { %p1571_p5 = por %p234_p2, %p233_p0  ;;  %p1575_p6 = por %p240_p4, %p239_p3 }
   0xa   : > { %p1069_p7 = scmp.ge.s32.totalorder %s1471_s12, 1  ;;  %p291_p8 = scmp.lt.s32.totalorder %s1471_s12, 3 }
   0xc   : > { %p292_p9 = pnand %p1069_p7, %p291_p8 }
   0xd   : > { %s327_s21 = smul.u32 (!%p292_p9), 3, %s1554_s13  ;;  %vm340_vm0 = vcmask (!%p292_p9), 31744   ;;  %v394_v3 = vld [vmem:[%s1872_s1] sm:$0xff] (!%p292_p9)  ;;  %v395_v4 = vld [vmem:[%s1872_s1 + $0x8] sm:$0xf] (!%p292_p9)  ;;  %vm413_vm1 = vcmask (!%p292_p9), 1043456  }
   0xe   : > { %295 = sbr.rel (%p292_p9) target bundleno = 1485 (0x5cd), region = 56  ;;  %v1473_v6 = vmov (!%p292_p9), 0.0|0.0   ;;  %v1267_v7 = vpack.c.bf16 (!%p292_p9), %v395_v4, %v394_v3  ;;  %vm1474_vm2 = vmmov (!%p292_p9), 1   ;;  %vm1475_vm4 = vmmov (!%p292_p9), 0   ;;  %s1477_s14 = smov (!%p292_p9), 4   ;;  %v554_v35 = vld [vmem:[%s1874_s3] sm:$0xff] (!%p292_p9) }
   0xf   : > { %p328_p10 = scmp.lt.s32.totalorder (!%p292_p9), %s327_s21, 5  ;;  %1266 = vmatprep.subr.bf16.mxu0 (!%p292_p9), %v1473_v6  ;;  %vm1268_vm3 = vmpackc.low (!%p292_p9), %vm413_vm1, %vm1474_vm2  ;;  %1270 = vmatprep.subr.bf16.mxu1 (!%p292_p9), %v1473_v6  ;;  %v1476_v14 = vmov (!%p292_p9), 0.0   ;;  %s1478_s16 = smov (!%p292_p9), 8   ;;  %vm365_vm5 = vcmask (!%p292_p9), 64544   ;;  %vm387_vm6 = vcmask (!%p292_p9), 97344   ;;  %vm403_vm7 = vcmask (!%p292_p9), 97280  }
  0x10   : > { %1269 = vmatpush3.bf16.msk.msra.mxu0 (!%p292_p9), %vm1268_vm3, %v1267_v7  ;;  %1158 = vmatprep.mubr.msk.f32.mxu0 (!%p292_p9), %vm1475_vm4, %v1476_v14  ;;  %v555_v36 = vld [vmem:[%s1874_s3 + $0x8] sm:$0xff] (!%p292_p9)  ;;  %v556_v37 = vld [vmem:[%s1874_s3 + $0x10] sm:$0xff] (!%p292_p9)  ;;  %v557_v39 = vld [vmem:[%s1874_s3 + $0x18] sm:$0xff] (!%p292_p9)  ;;  %vm500_vm8 = vcmask (!%p292_p9), 261120   ;;  %s1479_s24 = smov (!%p292_p9), 32   ;;  %vm525_vm9 = vcmask (!%p292_p9), 523520  }
  0x11   : > { %1191 = vmatprep.mubr.msk.f32.mxu1 (!%p292_p9), %vm1475_vm4, %v1476_v14  ;;  %1288 = vmatprep.subr.bf16.mxu0 (!%p292_p9), %v1473_v6  ;;  %v1271_v38 = vpack.c.bf16 (!%p292_p9), %v555_v36, %v554_v35  ;;  %v1274_v40 = vpack.c.bf16 (!%p292_p9), %v557_v39, %v556_v37  ;;  %v558_v41 = vld [vmem:[%s1874_s3 + $0x20] sm:$0xff] (!%p292_p9)  ;;  %v559_v42 = vld [vmem:[%s1874_s3 + $0x28] sm:$0xff] (!%p292_p9)  ;;  %v560_v51 = vld [vmem:[%s1874_s3 + $0x30] sm:$0xff] (!%p292_p9)  ;;  %vm547_vm10 = vcmask (!%p292_p9), 785920   ;;  %vm573_vm11 = vcmask (!%p292_p9), 785408   ;;  %s1103_s28 = smul.u32 (!%p292_p9), 384, %s1554_s13 }
  0x12   : > { %v1277_v43 = vpack.c.bf16 (!%p292_p9), %v559_v42, %v558_v41  ;;  %v1074_v44 = vld [vmem:[%s1873_s2] ss:$0 sm:$0xff] (!%p292_p9)  ;;  %v561_v52 = vld [vmem:[%s1874_s3 + $0x38] sm:$0xff] (!%p292_p9)  ;;  %v563_v58 = vld [vmem:[%s1874_s3 + $0x48] sm:$0xff] (!%p292_p9)  ;;  %s1481_s13 = smov (!%p292_p9), [#allocation3]  }
  0x13   : > { %1272 = vmatpush3.bf16.msra.mxu1 (!%p292_p9), %v1271_v38  ;;  %v1280_v53 = vpack.c.bf16 (!%p292_p9), %v561_v52, %v560_v51  ;;  %v562_v57 = vld [vmem:[%s1874_s3 + $0x40] sm:$0xff] (!%p292_p9)  ;;  %v564_v61 = vld [vmem:[%s1874_s3 + $0x50] sm:$0xff] (!%p292_p9)  ;;  %v565_v62 = vld [vmem:[%s1874_s3 + $0x58] sm:$0xff] (!%p292_p9)  ;;  %s1827_s17 = scalar_lea.hbm (!%p292_p9), %s1880_s9, %s1103_s28 }
  0x14   : > { %1273 = vmatprep.subr.bf16.mxu1 (!%p292_p9), %v1473_v6  ;;  %v1283_v59 = vpack.c.bf16 (!%p292_p9), %v563_v58, %v562_v57  ;;  %v722_v35 = vld [vmem:[%s1876_s5 + $0x28] sm:$0xff] (!%p292_p9)  ;;  %v1082_v37 = vld [vmem:[%s1875_s4] ss:$0 sm:$0xff] (!%p292_p9) }
  0x15   : > { %s1888_s21 = smov (!%p328_p10, %s327_s21), 5  ;;  %v726_v51 = vld [vmem:[%s1876_s5 + $0x48] sm:$0xff] }
  0x16   : > { %s1070_s22 = sshll.u32 %s1888_s21, 3 }
  0x17   : > { %s331_s25 = scalar_lea.vmem %s1871_s0, %s1070_s22  ;;  %1275 = vmatpush3.bf16.msra.mxu1 %v1274_v40  ;;  %s1413_s22 = sshll.u32 %s1481_s13, 4  ;;  %s1414_s22 = int_to_ptr.vmem [resolvable:$false] %s1413_s22 }
  0x18   : > { %v334_v0 = vld [vmem:[%s331_s25] sm:$0xff]  ;;  %v335_v1 = vld [vmem:[%s331_s25 + $0x8] sm:$0xff]  ;;  %v336_v2 = vld [vmem:[%s331_s25 + $0x10] sm:$0xff]  ;;  %1276 = vmatprep.subr.bf16.mxu1 %v1473_v6  ;;  %s1480_s25 = smov 64   ;;  %s1415_s23 = scalar_lea.vmem %s1414_s22, 768 }
  0x19   : > { %1385 = vtanh.f32 %v334_v0  ;;  %v1286_v0 = vpack.c.bf16 %v565_v62, %v564_v61 }
  0x1a   : > { %1387 = vtanh.f32 %v335_v1 }
  0x1b   : > { %1389 = vtanh.f32 %v336_v2  ;;  %1278 = vmatpush3.bf16.msra.mxu1 %v1277_v43 }
  0x1c   : > { %1279 = vmatprep.subr.bf16.mxu1 %v1473_v6 }
  0x1f   : > { %1281 = vmatpush3.bf16.msra.mxu1 %v1280_v53 }
  0x20   : > { %1282 = vmatprep.subr.bf16.mxu1 %v1473_v6 }
  0x23   : > { %v1386_v5 = vpop.eup %1385  ;;  %1284 = vmatpush3.bf16.msra.mxu1 %v1283_v59 }
  0x24   : > { %v1388_v8 = vpop.eup %1387  ;;  %v344_v9 = vadd.f32 %v1386_v5, %v1386_v5  ;;  %341 = vst.msk [vmem:[#allocation2] sm:$0xff] %vm340_vm0, %v1386_v5  ;;  %1285 = vmatprep.subr.bf16.mxu1 %v1473_v6 }
  0x25   : > { %v1390_v10 = vpop.eup %1389  ;;  %v345_v11 = vadd.f32 %v1388_v8, %v1388_v8  ;;  %342 = vst.msk [vmem:[#allocation2 + $0x8] sm:$0xff] %vm340_vm0, %v1388_v8 }
  0x26   : > { %v347_v12 = vmul.f32 %v1386_v5, %v344_v9  ;;  %v346_v13 = vadd.f32 %v1390_v10, %v1390_v10  ;;  %343 = vst.msk [vmem:[#allocation2 + $0x10] sm:$0xff] %vm340_vm0, %v1390_v10 }
  0x27   : > { %v348_v15 = vmul.f32 %v1388_v8, %v345_v11  ;;  %1287 = vmatpush3.bf16.msra.mxu1 %v1286_v0 }
  0x28   : > { %v1071_v16 = vadd.f32 -1.0, %v347_v12  ;;  %v349_v17 = vmul.f32 %v1390_v10, %v346_v13  ;;  %1324 = vmatprep.subr.bf16.mxu1 %v1473_v6 }
  0x29   : > { %v1072_v18 = vadd.f32 -1.0, %v348_v15 }
  0x2a   : > { %356 = vrot.lane.b32.xlu0 %v1071_v16, %s1477_s14  ;;  %v369_v19 = vmul.f32 %v1071_v16, %v344_v9  ;;  %v1073_v20 = vadd.f32 -1.0, %v349_v17 }
  0x2b   : > { %358 = vrot.lane.b32.xlu1 %v1072_v18, %s1477_s14  ;;  %v370_v21 = vmul.f32 %v1072_v18, %v345_v11 }
  0x2c   : > { %v372_v22 = vsub.f32 %v369_v19, %v1386_v5  ;;  %v371_v23 = vmul.f32 %v1073_v20, %v346_v13 }
  0x2d   : > { %v373_v24 = vsub.f32 %v370_v21, %v1388_v8 }
  0x2e   : > { %378 = vrot.lane.b32.xlu0 %v372_v22, %s1478_s16  ;;  %v374_v25 = vsub.f32 %v371_v23, %v1390_v10 }
  0x2f   : > { %380 = vrot.lane.b32.xlu1 %v373_v24, %s1478_s16 }
  0x32   : > { %360 = vrot.lane.b32.xlu0 %v1073_v20, %s1477_s14 }
  0x33   : > { %382 = vrot.lane.b32.xlu1 %v374_v25, %s1478_s16 }
  0x9c   : > { %v357_v26 = vpop.permute.xlu0 %356 }
  0x9d   : > { %366 = vst.msk [vmem:[#allocation2] sm:$0xff] %vm365_vm5, %v357_v26  ;;  %v359_v27 = vpop.permute.xlu1 %358 }
  0x9e   : > { %367 = vst.msk [vmem:[#allocation2 + $0x8] sm:$0xff] %vm365_vm5, %v359_v27 }
  0xa0   : > { %v379_v28 = vpop.permute.xlu0 %378 }
  0xa1   : > { %388 = vst.msk [vmem:[#allocation2] sm:$0xff] %vm387_vm6, %v379_v28  ;;  %v381_v29 = vpop.permute.xlu1 %380  ;;  %v717_v28 = vld [vmem:[%s1876_s5] sm:$0xff] }
  0xa2   : > { %389 = vst.msk [vmem:[#allocation2 + $0x8] sm:$0xff] %vm387_vm6, %v381_v29  ;;  %v718_v29 = vld [vmem:[%s1876_s5 + $0x8] sm:$0xff] }
  0xa4   : > { %v361_v30 = vpop.permute.xlu0 %360 }
  0xa5   : > { %368 = vst.msk [vmem:[#allocation2 + $0x10] sm:$0xff] %vm365_vm5, %v361_v30  ;;  %v383_v31 = vpop.permute.xlu1 %382  ;;  %v719_v30 = vld [vmem:[%s1876_s5 + $0x10] sm:$0xff] }
  0xa6   : > { %390 = vst.msk [vmem:[#allocation2 + $0x10] sm:$0xff] %vm387_vm6, %v383_v31  ;;  %v1289_v31 = vpack.c.bf16 %v718_v29, %v717_v28  ;;  %v884_v28 = vld [vmem:[%s1878_s7 + $0x28] sm:$0xff] }
  0xa8   : > { %v391_v32 = vld [vmem:[#allocation2] sm:$0xff] }
  0xa9   : > { %1159 = vmatmul.mubr.msk.f32.vlgmr.msra.gmra.mrb[0].mxu0 %vm403_vm7, %v391_v32  ;;  %v392_v33 = vld [vmem:[#allocation2 + $0x8] sm:$0xff] }
  0xaa   : > { %1161 = vmatprep.mubr.msk.f32.mxu0 %vm1475_vm4, %v1476_v14  ;;  %v720_v32 = vld [vmem:[%s1876_s5 + $0x18] sm:$0xff]  ;;  %1290 = vmatpush3.bf16.msra.mxu0 %v1289_v31 }
  0xab   : > { %1291 = vmatprep.subr.bf16.mxu0 %v1473_v6 }
  0xad   : > { %1162 = vmatmul.mubr.msk.f32.gmra.mrb[2].mxu0 %vm403_vm7, %v392_v33  ;;  %v393_v34 = vld [vmem:[#allocation2 + $0x10] sm:$0xff]  ;;  %v1292_v33 = vpack.c.bf16 %v720_v32, %v719_v30 }
  0xae   : > { %1164 = vmatprep.mubr.msk.f32.mxu0 %vm1475_vm4, %v1476_v14  ;;  %v1089_v30 = vld [vmem:[%s1877_s6] ss:$0 sm:$0xff] }
  0xaf   : > { %1293 = vmatpush3.bf16.msra.mxu0 %v1292_v33 }
  0xb0   : > { %1294 = vmatprep.subr.bf16.mxu0 %v1473_v6 }
  0xb1   : > { %1165 = vmatmul.mubr.msk.f32.gmra.mrb[4].mxu0 %vm403_vm7, %v393_v34  ;;  %v721_v34 = vld [vmem:[%s1876_s5 + $0x20] sm:$0xff] }
  0xb2   : > { %1224 = vmatprep.mubr.msk.f32.mxu0 %vm1475_vm4, %v1476_v14  ;;  %v1295_v36 = vpack.c.bf16 %v722_v35, %v721_v34 }
  0xb4   : > { %1296 = vmatpush3.bf16.msra.mxu0 %v1295_v36 }
  0xb5   : > { %1297 = vmatprep.subr.bf16.mxu0 %v1473_v6 }
 0x17c   : > { %v483_v45 = vpop.f32.mrb[0].mxu0 }
 0x17d   : > { %v484_v46 = vadd.f32 %v1074_v44, %v483_v45  ;;  %v1160_v47 = vpop.f32.mrb[1].mxu0  ;;  %v724_v45 = vld [vmem:[%s1876_s5 + $0x38] sm:$0xff] }
 0x17f   : > { %1391 = vtanh.f32 %v484_v46 }
 0x180   : > { %v488_v48 = vpop.f32.mrb[2].mxu0 }
 0x181   : > { %v489_v49 = vadd.f32 %v1074_v44, %v488_v48  ;;  %v1163_v50 = vpop.f32.mrb[3].mxu0 }
 0x182   : > { %v725_v50 = vld [vmem:[%s1876_s5 + $0x40] sm:$0xff] }
 0x183   : > { %1393 = vtanh.f32 %v489_v49  ;;  %v1301_v52 = vpack.c.bf16 %v726_v51, %v725_v50  ;;  %v890_v50 = vld [vmem:[%s1878_s7 + $0x58] sm:$0xff] }
 0x184   : > { %v493_v54 = vpop.f32.mrb[4].mxu0 }
 0x185   : > { %v494_v55 = vadd.f32 %v1074_v44, %v493_v54  ;;  %v1166_v56 = vpop.f32.mrb[5].mxu0  ;;  %v723_v44 = vld [vmem:[%s1876_s5 + $0x30] sm:$0xff] }
 0x186   : > { %v1298_v46 = vpack.c.bf16 %v724_v45, %v723_v44  ;;  %v727_v54 = vld [vmem:[%s1876_s5 + $0x50] sm:$0xff]  ;;  %v887_v44 = vld [vmem:[%s1878_s7 + $0x40] sm:$0xff]  ;;  %v888_v45 = vld [vmem:[%s1878_s7 + $0x48] sm:$0xff] }
 0x187   : > { %1395 = vtanh.f32 %v494_v55  ;;  %v728_v55 = vld [vmem:[%s1876_s5 + $0x58] sm:$0xff] }
 0x188   : > { %1299 = vmatpush3.bf16.msra.mxu0 %v1298_v46  ;;  %v1304_v57 = vpack.c.bf16 %v728_v55, %v727_v54 }
 0x189   : > { %v1392_v60 = vpop.eup %1391  ;;  %1300 = vmatprep.subr.bf16.mxu0 %v1473_v6 }
 0x18a   : > { %v504_v63 = vadd.f32 %v1392_v60, %v1392_v60  ;;  %501 = vst.msk [vmem:[#allocation2] sm:$0xff] %vm500_vm8, %v1392_v60 }
 0x18c   : > { %v507_v1 = vmul.f32 %v1392_v60, %v504_v63  ;;  %1302 = vmatpush3.bf16.msra.mxu0 %v1301_v52 }
 0x18d   : > { %v1394_v2 = vpop.eup %1393  ;;  %1303 = vmatprep.subr.bf16.mxu0 %v1473_v6 }
 0x18e   : > { %v1079_v3 = vadd.f32 -1.0, %v507_v1  ;;  %v505_v4 = vadd.f32 %v1394_v2, %v1394_v2  ;;  %502 = vst.msk [vmem:[#allocation2 + $0x8] sm:$0xff] %vm500_vm8, %v1394_v2 }
 0x190   : > { %516 = vrot.lane.b32.xlu0 %v1079_v3, %s1479_s24  ;;  %v529_v5 = vmul.f32 %v1079_v3, %v504_v63  ;;  %v508_v7 = vmul.f32 %v1394_v2, %v505_v4  ;;  %1305 = vmatpush3.bf16.msra.mxu0 %v1304_v57 }
 0x191   : > { %v1396_v8 = vpop.eup %1395  ;;  %1306 = vmatprep.subr.bf16.mxu0 %v1473_v6 }
 0x192   : > { %v532_v9 = vsub.f32 %v529_v5, %v1392_v60  ;;  %v1080_v10 = vadd.f32 -1.0, %v508_v7  ;;  %v506_v11 = vadd.f32 %v1396_v8, %v1396_v8  ;;  %503 = vst.msk [vmem:[#allocation2 + $0x10] sm:$0xff] %vm500_vm8, %v1396_v8 }
 0x194   : > { %538 = vrot.lane.b32.xlu1 %v532_v9, %s1480_s25  ;;  %518 = vrot.lane.b32.xlu0 %v1080_v10, %s1479_s24  ;;  %v530_v12 = vmul.f32 %v1080_v10, %v505_v4  ;;  %v509_v13 = vmul.f32 %v1396_v8, %v506_v11 }
 0x196   : > { %v533_v15 = vsub.f32 %v530_v12, %v1394_v2  ;;  %v1081_v16 = vadd.f32 -1.0, %v509_v13 }
 0x198   : > { %540 = vrot.lane.b32.xlu1 %v533_v15, %s1480_s25  ;;  %520 = vrot.lane.b32.xlu0 %v1081_v16, %s1479_s24  ;;  %v531_v17 = vmul.f32 %v1081_v16, %v506_v11 }
 0x19a   : > { %v534_v18 = vsub.f32 %v531_v17, %v1396_v8 }
 0x19c   : > { %542 = vrot.lane.b32.xlu1 %v534_v18, %s1480_s25 }
 0x202   : > { %v517_v19 = vpop.permute.xlu0 %516 }
 0x203   : > { %526 = vst.msk [vmem:[#allocation2] sm:$0xff] %vm525_vm9, %v517_v19 }
 0x206   : > { %v539_v20 = vpop.permute.xlu1 %538  ;;  %v519_v21 = vpop.permute.xlu0 %518 }
 0x207   : > { %548 = vst.msk [vmem:[#allocation2] sm:$0xff] %vm547_vm10, %v539_v20 }
 0x208   : > { %527 = vst.msk [vmem:[#allocation2 + $0x8] sm:$0xff] %vm525_vm9, %v519_v21  ;;  %v879_v21 = vld [vmem:[%s1878_s7] sm:$0xff] }
 0x20a   : > { %v541_v22 = vpop.permute.xlu1 %540  ;;  %v521_v23 = vpop.permute.xlu0 %520 }
 0x20b   : > { %549 = vst.msk [vmem:[#allocation2 + $0x8] sm:$0xff] %vm547_vm10, %v541_v22  ;;  %v880_v22 = vld [vmem:[%s1878_s7 + $0x8] sm:$0xff] }
 0x20c   : > { %528 = vst.msk [vmem:[#allocation2 + $0x10] sm:$0xff] %vm525_vm9, %v521_v23  ;;  %v881_v23 = vld [vmem:[%s1878_s7 + $0x10] sm:$0xff] }
 0x20e   : > { %v543_v24 = vpop.permute.xlu1 %542  ;;  %v551_v25 = vld [vmem:[#allocation2] sm:$0xff] }
 0x20f   : > { %550 = vst.msk [vmem:[#allocation2 + $0x10] sm:$0xff] %vm547_vm10, %v543_v24  ;;  %1192 = vmatmul.mubr.msk.f32.vlgmr.msra.gmra.mrb[0].mxu1 %vm573_vm11, %v551_v25  ;;  %v1307_v24 = vpack.c.bf16 %v880_v22, %v879_v21  ;;  %v882_v25 = vld [vmem:[%s1878_s7 + $0x18] sm:$0xff] }
 0x210   : > { %1194 = vmatprep.mubr.msk.f32.mxu1 %vm1475_vm4, %v1476_v14 }
 0x211   : > { %1330 = vmatpush3.bf16.msra.mxu1 %v1307_v24 }
 0x212   : > { %v552_v26 = vld [vmem:[#allocation2 + $0x8] sm:$0xff]  ;;  %1325 = vmatprep.subr.bf16.mxu1 %v1473_v6 }
 0x213   : > { %1195 = vmatmul.mubr.msk.f32.gmra.mrb[2].mxu1 %vm573_vm11, %v552_v26  ;;  %v1310_v26 = vpack.c.bf16 %v882_v25, %v881_v23 }
 0x214   : > { %1197 = vmatprep.mubr.msk.f32.mxu1 %vm1475_vm4, %v1476_v14 }
 0x215   : > { %1331 = vmatpush3.bf16.msra.mxu1 %v1310_v26 }
 0x216   : > { %v553_v27 = vld [vmem:[#allocation2 + $0x10] sm:$0xff]  ;;  %1326 = vmatprep.subr.bf16.mxu1 %v1473_v6 }
 0x217   : > { %1198 = vmatmul.mubr.msk.f32.gmra.mrb[4].mxu1 %vm573_vm11, %v553_v27  ;;  %v883_v27 = vld [vmem:[%s1878_s7 + $0x20] sm:$0xff] }
 0x218   : > { %1260 = vmatprep.mubr.msk.f32.mxu1 %vm1475_vm4, %v1476_v14  ;;  %v1313_v29 = vpack.c.bf16 %v884_v28, %v883_v27 }
 0x21a   : > { %1332 = vmatpush3.bf16.msra.mxu1 %v1313_v29 }
 0x21b   : > { %1327 = vmatprep.subr.bf16.mxu1 %v1473_v6 }
 0x2e2   : > { %v649_v38 = vpop.f32.mrb[0].mxu1 }
 0x2e3   : > { %v650_v39 = vadd.f32 %v1082_v37, %v649_v38  ;;  %v1193_v40 = vpop.f32.mrb[1].mxu1 }
 0x2e4   : > { %v885_v40 = vld [vmem:[%s1878_s7 + $0x30] sm:$0xff] }
 0x2e5   : > { %1397 = vtanh.f32 %v650_v39 }
 0x2e6   : > { %v654_v41 = vpop.f32.mrb[2].mxu1 }
 0x2e7   : > { %v655_v42 = vadd.f32 %v1082_v37, %v654_v41  ;;  %v1196_v43 = vpop.f32.mrb[3].mxu1  ;;  %v886_v41 = vld [vmem:[%s1878_s7 + $0x38] sm:$0xff] }
 0x2e9   : > { %1399 = vtanh.f32 %v655_v42  ;;  %v1316_v42 = vpack.c.bf16 %v886_v41, %v885_v40 }
 0x2ea   : > { %v659_v47 = vpop.f32.mrb[4].mxu1 }
 0x2eb   : > { %v660_v48 = vadd.f32 %v1082_v37, %v659_v47  ;;  %v1199_v49 = vpop.f32.mrb[5].mxu1  ;;  %1333 = vmatpush3.bf16.msra.mxu1 %v1316_v42  ;;  %v1319_v47 = vpack.c.bf16 %v888_v45, %v887_v44 }
 0x2ec   : > { %1328 = vmatprep.subr.bf16.mxu1 %v1473_v6  ;;  %v889_v49 = vld [vmem:[%s1878_s7 + $0x50] sm:$0xff] }
 0x2ed   : > { %1401 = vtanh.f32 %v660_v48 }
 0x2ef   : > { %v1398_v53 = vpop.eup %1397  ;;  %1334 = vmatpush3.bf16.msra.mxu1 %v1319_v47 }
 0x2f0   : > { %666 = vst.msk [vmem:[#allocation2] sm:$0xff] %vm500_vm8, %v1398_v53  ;;  %v669_v56 = vadd.f32 %v1398_v53, %v1398_v53  ;;  %1329 = vmatprep.subr.bf16.mxu1 %v1473_v6 }
 0x2f2   : > { %v672_v58 = vmul.f32 %v1398_v53, %v669_v56 }
 0x2f3   : > { %v1400_v59 = vpop.eup %1399 }
 0x2f4   : > { %667 = vst.msk [vmem:[#allocation2 + $0x8] sm:$0xff] %vm500_vm8, %v1400_v59  ;;  %v1086_v60 = vadd.f32 -1.0, %v672_v58  ;;  %v670_v61 = vadd.f32 %v1400_v59, %v1400_v59 }
 0x2f6   : > { %681 = vrot.lane.b32.xlu0 %v1086_v60, %s1479_s24  ;;  %v673_v62 = vmul.f32 %v1400_v59, %v670_v61  ;;  %v693_v63 = vmul.f32 %v1086_v60, %v669_v56 }
 0x2f7   : > { %v1402_v0 = vpop.eup %1401 }
 0x2f8   : > { %668 = vst.msk [vmem:[#allocation2 + $0x10] sm:$0xff] %vm500_vm8, %v1402_v0  ;;  %v1087_v1 = vadd.f32 -1.0, %v673_v62  ;;  %v696_v2 = vsub.f32 %v693_v63, %v1398_v53  ;;  %v671_v3 = vadd.f32 %v1402_v0, %v1402_v0  ;;  %v1322_v53 = vpack.c.bf16 %v890_v50, %v889_v49 }
 0x2fa   : > { %683 = vrot.lane.b32.xlu0 %v1087_v1, %s1479_s24  ;;  %702 = vrot.lane.b32.xlu1 %v696_v2, %s1480_s25  ;;  %v694_v4 = vmul.f32 %v1087_v1, %v670_v61  ;;  %v674_v5 = vmul.f32 %v1402_v0, %v671_v3 }
 0x2fb   : > { %1335 = vmatpush3.bf16.msra.mxu1 %v1322_v53 }
 0x2fc   : > { %v697_v7 = vsub.f32 %v694_v4, %v1400_v59  ;;  %v1088_v8 = vadd.f32 -1.0, %v674_v5 }
 0x2fe   : > { %704 = vrot.lane.b32.xlu1 %v697_v7, %s1480_s25  ;;  %685 = vrot.lane.b32.xlu0 %v1088_v8, %s1479_s24  ;;  %v695_v9 = vmul.f32 %v1088_v8, %v671_v3 }
 0x300   : > { %v698_v10 = vsub.f32 %v695_v9, %v1402_v0 }
 0x302   : > { %706 = vrot.lane.b32.xlu1 %v698_v10, %s1480_s25 }
 0x368   : > { %v682_v11 = vpop.permute.xlu0 %681 }
 0x369   : > { %690 = vst.msk [vmem:[#allocation2] sm:$0xff] %vm525_vm9, %v682_v11 }
 0x36c   : > { %v684_v12 = vpop.permute.xlu0 %683  ;;  %v703_v13 = vpop.permute.xlu1 %702 }
 0x36d   : > { %691 = vst.msk [vmem:[#allocation2 + $0x8] sm:$0xff] %vm525_vm9, %v684_v12  ;;  %v1096_v12 = vld [vmem:[%s1879_s8] ss:$0 sm:$0xff] }
 0x36e   : > { %711 = vst.msk [vmem:[#allocation2] sm:$0xff] %vm547_vm10, %v703_v13 }
 0x370   : > { %v705_v15 = vpop.permute.xlu1 %704  ;;  %v686_v16 = vpop.permute.xlu0 %685 }
 0x371   : > { %712 = vst.msk [vmem:[#allocation2 + $0x8] sm:$0xff] %vm547_vm10, %v705_v15 }
 0x372   : > { %692 = vst.msk [vmem:[#allocation2 + $0x10] sm:$0xff] %vm525_vm9, %v686_v16 }
 0x374   : > { %v707_v17 = vpop.permute.xlu1 %706 }
 0x375   : > { %v714_v18 = vld [vmem:[#allocation2] sm:$0xff]  ;;  %713 = vst.msk [vmem:[#allocation2 + $0x10] sm:$0xff] %vm547_vm10, %v707_v17 }
 0x376   : > { %1225 = vmatmul.mubr.msk.f32.vlgmr.msra.gmra.mrb[6].mxu0 %vm573_vm11, %v714_v18 }
 0x377   : > { %1227 = vmatprep.mubr.msk.f32.mxu0 %vm1475_vm4, %v1476_v14  ;;  %1308 = vmatpush3.bf16.msra.mxu0 %v1307_v24 }
 0x378   : > { %v715_v19 = vld [vmem:[#allocation2 + $0x8] sm:$0xff]  ;;  %1309 = vmatprep.subr.bf16.mxu0 %v1473_v6 }
 0x37a   : > { %1228 = vmatmul.mubr.msk.f32.gmra.mrb[8].mxu0 %vm573_vm11, %v715_v19 }
 0x37b   : > { %1230 = vmatprep.mubr.msk.f32.mxu0 %vm1475_vm4, %v1476_v14  ;;  %1311 = vmatpush3.bf16.msra.mxu0 %v1310_v26 }
 0x37c   : > { %v716_v20 = vld [vmem:[#allocation2 + $0x10] sm:$0xff]  ;;  %1312 = vmatprep.subr.bf16.mxu0 %v1473_v6 }
 0x37e   : > { %1231 = vmatmul.mubr.msk.f32.gmra.mrb[10].mxu0 %vm573_vm11, %v716_v20 }
 0x37f   : > { %1257 = vmatprep.mubr.msk.f32.mxu0 %vm1475_vm4, %v1476_v14  ;;  %1314 = vmatpush3.bf16.msra.mxu0 %v1313_v29 }
 0x380   : > { %1315 = vmatprep.subr.bf16.mxu0 %v1473_v6 }
 0x383   : > { %1317 = vmatpush3.bf16.msra.mxu0 %v1316_v42 }
 0x384   : > { %1318 = vmatprep.subr.bf16.mxu0 %v1473_v6 }
 0x387   : > { %1320 = vmatpush3.bf16.msra.mxu0 %v1319_v47 }
 0x388   : > { %1321 = vmatprep.subr.bf16.mxu0 %v1473_v6 }
 0x38b   : > { %1323 = vmatpush3.bf16.msra.mxu0 %v1322_v53 }
 0x449   : > { %v811_v31 = vpop.f32.mrb[6].mxu0 }
 0x44a   : > { %v812_v32 = vadd.f32 %v1089_v30, %v811_v31  ;;  %v1226_v33 = vpop.f32.mrb[7].mxu0 }
 0x44c   : > { %1403 = vtanh.f32 %v812_v32 }
 0x44d   : > { %v816_v34 = vpop.f32.mrb[8].mxu0 }
 0x44e   : > { %v817_v35 = vadd.f32 %v1089_v30, %v816_v34  ;;  %v1229_v36 = vpop.f32.mrb[9].mxu0 }
 0x450   : > { %1405 = vtanh.f32 %v817_v35 }
 0x451   : > { %v821_v37 = vpop.f32.mrb[10].mxu0 }
 0x452   : > { %v822_v38 = vadd.f32 %v1089_v30, %v821_v37  ;;  %v1232_v39 = vpop.f32.mrb[11].mxu0 }
 0x454   : > { %1407 = vtanh.f32 %v822_v38 }
 0x456   : > { %v1404_v43 = vpop.eup %1403 }
 0x457   : > { %828 = vst.msk [vmem:[#allocation2] sm:$0xff] %vm500_vm8, %v1404_v43  ;;  %v831_v46 = vadd.f32 %v1404_v43, %v1404_v43 }
 0x459   : > { %v834_v52 = vmul.f32 %v1404_v43, %v831_v46 }
 0x45a   : > { %v1406_v48 = vpop.eup %1405 }
 0x45b   : > { %829 = vst.msk [vmem:[#allocation2 + $0x8] sm:$0xff] %vm500_vm8, %v1406_v48  ;;  %v832_v51 = vadd.f32 %v1406_v48, %v1406_v48  ;;  %v1093_v57 = vadd.f32 -1.0, %v834_v52 }
 0x45d   : > { %v835_v54 = vmul.f32 %v1406_v48, %v832_v51  ;;  %v855_v6 = vmul.f32 %v1093_v57, %v831_v46 }
 0x45e   : > { %v1408_v55 = vpop.eup %1407 }
 0x45f   : > { %830 = vst.msk [vmem:[#allocation2 + $0x10] sm:$0xff] %vm500_vm8, %v1408_v55  ;;  %v1094_v56 = vadd.f32 -1.0, %v835_v54  ;;  %v833_v58 = vadd.f32 %v1408_v55, %v1408_v55  ;;  %v858_v63 = vsub.f32 %v855_v6, %v1404_v43 }
 0x461   : > { %845 = vrot.lane.b32.xlu0 %v1094_v56, %s1479_s24  ;;  %v856_v59 = vmul.f32 %v1094_v56, %v832_v51  ;;  %v836_v60 = vmul.f32 %v1408_v55, %v833_v58 }
 0x463   : > { %v859_v61 = vsub.f32 %v856_v59, %v1406_v48  ;;  %v1095_v62 = vadd.f32 -1.0, %v836_v60 }
 0x465   : > { %843 = vrot.lane.b32.xlu0 %v1093_v57, %s1479_s24  ;;  %866 = vrot.lane.b32.xlu1 %v859_v61, %s1480_s25  ;;  %v857_v0 = vmul.f32 %v1095_v62, %v833_v58 }
 0x467   : > { %v860_v1 = vsub.f32 %v857_v0, %v1408_v55 }
 0x469   : > { %864 = vrot.lane.b32.xlu0 %v858_v63, %s1480_s25  ;;  %847 = vrot.lane.b32.xlu1 %v1095_v62, %s1479_s24  ;;  %s324_s24 = sand.u32 1, %s1463_s10  }
 0x46a   : > { %s1829_s21 = scalar_lea.sflag [#allocation4], %s324_s24 }
 0x46d   : > { %868 = vrot.lane.b32.xlu1 %v860_v1, %s1480_s25  ;;  %s1336_s25 = smul.u32 24, %s324_s24 }
 0x46f   : > { %s326_s26 = scalar_lea.vmem [#allocation3], %s1336_s25 }
 0x470   : > { %s1004_s27 = sshll.u32 %s326_s26, 4  ;;  %s1822_s27 = int_to_ptr.vmem [resolvable:$true] %s1004_s27 }
 0x471   : > { %s1409_s25 = scalar_lea.vmem %s1822_s27, 384  ;;  %p1416_p0 = scmp.lt.s32.totalorder %s1822_s27, %s1414_s22 }
 0x472   : > { %p1410_p11 = scmp.ne.s32.totalorder %s1822_s27, %s1409_s25  ;;  %p1417_p1 = scmp.lt.s32.totalorder %s1415_s23, %s1409_s25 }
 0x474   : > { %p1411_p12 = pnand %p1410_p11, %p1571_p5  ;;  %p1418_p2 = por %p1417_p1, %p1416_p0 }
 0x476   : > { %p1412_p13 = pneg %p1411_p12 }
 0x478   : > { %p1419_p3 = pnand %p1418_p2, %p1412_p13 }
 0x4d3   : > { %v846_v2 = vpop.permute.xlu0 %845 }
 0x4d4   : > { %853 = vst.msk [vmem:[#allocation2 + $0x8] sm:$0xff] %vm525_vm9, %v846_v2 }
 0x4d7   : > { %v844_v3 = vpop.permute.xlu0 %843  ;;  %v867_v4 = vpop.permute.xlu1 %866 }
 0x4d8   : > { %852 = vst.msk [vmem:[#allocation2] sm:$0xff] %vm525_vm9, %v844_v3 }
 0x4d9   : > { %874 = vst.msk [vmem:[#allocation2 + $0x8] sm:$0xff] %vm547_vm10, %v867_v4 }
 0x4db   : > { %v865_v5 = vpop.permute.xlu0 %864  ;;  %v848_v7 = vpop.permute.xlu1 %847 }
 0x4dc   : > { %873 = vst.msk [vmem:[#allocation2] sm:$0xff] %vm547_vm10, %v865_v5 }
 0x4dd   : > { %854 = vst.msk [vmem:[#allocation2 + $0x10] sm:$0xff] %vm525_vm9, %v848_v7 }
 0x4df   : > { %v869_v8 = vpop.permute.xlu1 %868 }
 0x4e0   : > { %v877_v9 = vld [vmem:[#allocation2 + $0x8] sm:$0xff]  ;;  %875 = vst.msk [vmem:[#allocation2 + $0x10] sm:$0xff] %vm547_vm10, %v869_v8 }
 0x4e1   : > { %1261 = vmatmul.mubr.msk.f32.vlgmr.msra.gmra.mrb[6].mxu1 %vm573_vm11, %v877_v9 }
 0x4e2   : > { %1263 = vmatprep.mubr.msk.f32.mxu1 %vm1475_vm4, %v1476_v14 }
 0x4e3   : > { %v876_v10 = vld [vmem:[#allocation2] sm:$0xff] }
 0x4e4   : > { %1258 = vmatmul.mubr.msk.f32.vlgmr.msra.gmra.mrb[12].mxu0 %vm573_vm11, %v876_v10 }
 0x4e7   : > { %v878_v11 = vld [vmem:[#allocation2 + $0x10] sm:$0xff] }
 0x4e8   : > { %1264 = vmatmul.mubr.msk.f32.gmra.mrb[8].mxu1 %vm573_vm11, %v878_v11 }
 0x5b4   : > { %v978_v13 = vpop.f32.mrb[6].mxu1 }
 0x5b5   : > { %v979_v15 = vadd.f32 %v1096_v12, %v978_v13  ;;  %v1262_v16 = vpop.f32.mrb[7].mxu1 }
 0x5b7   : > { %988 = vst [vmem:[%s326_s26 + $0x8] sm:$0xff] %v979_v15  ;;  %v973_v14 = vpop.f32.mrb[12].mxu0 }
 0x5b8   : > { %v974_v17 = vadd.f32 %v1096_v12, %v973_v14  ;;  %v1259_v18 = vpop.f32.mrb[13].mxu0 }
 0x5ba   : > { %987 = vst [vmem:[%s326_s26] sm:$0xff] %v974_v17 }
 0x5bb   : > { %v983_v19 = vpop.f32.mrb[8].mxu1 }
 0x5bc   : > { %v984_v20 = vadd.f32 %v1096_v12, %v983_v19  ;;  %v1265_v21 = vpop.f32.mrb[9].mxu1 }
 0x5be   : > { %989 = vst [vmem:[%s326_s26 + $0x10] sm:$0xff] %v984_v20 }
 0x5bf   : > { %1422 = shalt.err (!%p1419_p3)
}
 0x5c0   : > { %s1423_s24 = scalar_lea.hbm %s1827_s17, 384  ;;  %s1427_s29 = scalar_lea.hbm %s1880_s9, 768 }
 0x5c1   : > { %p1424_p4 = scmp.ne.s32.totalorder %s1827_s17, %s1423_s24  ;;  %p1428_p9 = scmp.lt.u32.totalorder %s1827_s17, %s1880_s9 }
 0x5c2   : > { %p1429_p10 = scmp.lt.u32.totalorder %s1427_s29, %s1423_s24  ;;  %p1431_p12 = scmp.lt.u32.totalorder %s1423_s24, %s1827_s17 }
 0x5c3   : > { %p1425_p7 = pnand %p1424_p4, %p1571_p5 }
 0x5c4   : > { %p1430_p11 = por %p1429_p10, %p1428_p9 }
 0x5c5   : > { %p1426_p8 = pneg %p1425_p7 }
 0x5c6   : > { %p1432_p13 = por %p1431_p12, %p1430_p11 }
 0x5c8   : > { %p1433_p0 = pnand %p1432_p13, %p1426_p8 }
 0x5ca   : > { %1436 = shalt.err (!%p1433_p0)
}
 0x5cb   : > { %s1482_s25 = smov 128  }
 0x5cc   : > { %1337 = dma.vmem_to_hbm [thread:$0]  (%p1571_p5), %s1822_s27, 384, %s1827_s17, %s1829_s21, %s1482_s25, %s1482_s25, %s1478_s16  }
 0x5cd PF: > { %p1343_p1 = scmp.ge.s32.totalorder %s1471_s12, 2  ;;  %s1019_s22 = sand.u32 1, %s1459_s30  }
 0x5ce   : > { %s1020_s23 = scalar_lea.sflag [#allocation4], %s1019_s22 }
 0x5cf   : > { %p1340_p2 = pnand %p1343_p1, %p1575_p6 }
 0x5d1   : > { %1454 = dma.done.wait (!%p1340_p2), %s1020_s23, 384  }
 0x5d2   : > { %1456 = vsyncadd (!%p1340_p2), %s1020_s23, 4294966912  ;;  %p19_p3 = scmp.ge.s32.totalorder %s1558_s15, 4   ;;  %s1883_s30 = smov %s1463_s10 }
 0x5d3   : > { %s1884_s10 = smov %s1467_s11  ;;  %s1885_s11 = smov %s1569_s18 }
 0x5d4   : > { %s1886_s12 = smov %s1558_s15  ;;  %21 = sbr.rel (!%p19_p3) target bundleno = 3 (0x3), region = 91 }
 0x5db   :  { %1025 = vsyncpa [#allocation4], 1 }
 0x5dc   :  { %1027 = vsyncpa [#allocation4 + $0x1], 1 }

</bundles_post_ra>
